<compile_context>
chip_gen: v6e
topology: v6e:2x2x1
jax: 0.10.0
libtpu: 0.0.40
codegen_flags: <defaults>
</compile_context>

<pallas_src>
import functools

import jax
import jax.numpy as jnp
from jax.experimental import pallas as pl
from jax.experimental.pallas import tpu as pltpu  # noqa: F401  (kept for parity / future tuning)


# ---------------------------------------------------------------------------
# Fused Pallas kernel: L-layer tanh RNN + Linear, single invocation
# ---------------------------------------------------------------------------
def _fused_net_kernel(x_ref, wih0_ref, wihR_ref, whh_ref, b_ref,
                      fcw_ref, fcb_ref, out_ref, *, S, B, L):
    """All weights / activations resident on-chip.

    x_ref   : (S, B, IN)       input sequence
    wih0_ref: (IN, H)          layer-0 W_ih^T (pre-transposed)
    wihR_ref: (max(L-1,1),H,H) layers 1..L-1 W_ih^T (dummy slice if L == 1)
    whh_ref : (L, H, H)        per-layer W_hh^T (pre-transposed)
    b_ref   : (L, 1, H)        per-layer combined bias (b_ih + b_hh)
    fcw_ref : (H, O)           fc weight^T
    fcb_ref : (1, O)           fc bias
    out_ref : (S, B, O)        final output
    """
    H = whh_ref.shape[-1]
    O = fcw_ref.shape[-1]

    # Layer-0 input, flattened so the hoisted projection is one M=S*B matmul.
    act = x_ref[...].reshape(S * B, x_ref.shape[-1])

    for l in range(L):                       # static unroll over layers
        wih_T = wih0_ref[...] if l == 0 else wihR_ref[l - 1]   # (IN_l, H)
        whh_T = whh_ref[l]                                     # (H, H)
        bias = b_ref[l]                                        # (1, H)

        # Hoisted input projection + fused bias: no time dependence.
        xp = jnp.dot(act, wih_T, preferred_element_type=jnp.float32) + bias

        # Serial recurrence: per step only h @ W_hh^T (+ tanh on the EUP).
        h = jnp.zeros((B, H), jnp.float32)
        outs = []
        for t in range(S):                   # static unroll over time (S small)
            h = jnp.tanh(
                xp[t * B:(t + 1) * B, :]
                + jnp.dot(h, whh_T, preferred_element_type=jnp.float32)
            )
            outs.append(h)
        act = jnp.concatenate(outs, axis=0)  # (S*B, H): next layer's input

    # Final Linear on the already-resident last-layer activations.
    y = jnp.dot(act, fcw_ref[...], preferred_element_type=jnp.float32) + fcb_ref[...]
    out_ref[...] = y.reshape(S, B, O).astype(out_ref.dtype)


# ---------------------------------------------------------------------------
# Wrapper: pre-transpose weights, pre-combine biases, one pallas_call
# ---------------------------------------------------------------------------
def net_forward(x, params):
    """Forward pass of Net: multi-layer tanh RNN + Linear.

    x: (seq_len, batch, input_size) -> (seq_len, batch, output_size)
    """
    S, B, _ = x.shape
    layers = params["rnn_layers"]
    L = len(layers)
    H = layers[0][0].shape[0]
    O = params["fc_w"].shape[0]

    # Host-side weight prep (done once, outside the serial recurrence).
    wih0_T = layers[0][0].T                                              # (IN, H)
    if L > 1:
        wihR_T = jnp.stack([w_ih.T for (w_ih, _, _, _) in layers[1:]])   # (L-1, H, H)
    else:
        wihR_T = jnp.zeros((1, H, H), jnp.float32)                       # unused dummy
    whh_T = jnp.stack([w_hh.T for (_, w_hh, _, _) in layers])            # (L, H, H)
    bias = jnp.stack([(b_ih + b_hh).reshape(1, H)
                      for (_, _, b_ih, b_hh) in layers])                 # (L, 1, H)
    fc_wT = params["fc_w"].T                                             # (H, O)
    fc_b = params["fc_b"].reshape(1, O)                                  # (1, O)

    kernel = functools.partial(_fused_net_kernel, S=S, B=B, L=L)
    return pl.pallas_call(
        kernel,
        out_shape=jax.ShapeDtypeStruct((S, B, O), jnp.float32),
        # No grid: one invocation. Default full-array BlockSpecs put every
        # operand in VMEM, and the total working set here is well under 1 MiB
        # (fits any generation's scoped VMEM, including v7x).
    )(x, wih0_T, wihR_T, whh_T, bias, fc_wT, fc_b)


# ---------------------------------------------------------------------------
# Deterministic parameter init (mimics PyTorch uniform(-1/sqrt(H), 1/sqrt(H)))
# ---------------------------------------------------------------------------
def init_params(key, input_size, hidden_size, output_size):
    num_layers = output_size  # nn.RNN(input_size, hidden_size, output_size)
    bound = 1.0 / jnp.sqrt(jnp.float32(hidden_size))
    layers = []
    for l in range(num_layers):
        in_dim = input_size if l == 0 else hidden_size
        key, k1, k2, k3, k4 = jax.random.split(key, 5)
        w_ih = jax.random.uniform(k1, (hidden_size, in_dim), jnp.float32, -bound, bound)
        w_hh = jax.random.uniform(k2, (hidden_size, hidden_size), jnp.float32, -bound, bound)
        b_ih = jax.random.uniform(k3, (hidden_size,), jnp.float32, -bound, bound)
        b_hh = jax.random.uniform(k4, (hidden_size,), jnp.float32, -bound, bound)
        layers.append((w_ih, w_hh, b_ih, b_hh))
    key, kw, kb = jax.random.split(key, 3)
    fc_w = jax.random.uniform(kw, (output_size, hidden_size), jnp.float32, -bound, bound)
    fc_b = jax.random.uniform(kb, (output_size,), jnp.float32, -bound, bound)
    return {"rnn_layers": layers, "fc_w": fc_w, "fc_b": fc_b}


# ---------------------------------------------------------------------------
# Pure-JAX reference for sanity check
# ---------------------------------------------------------------------------
def net_forward_ref(x, params):
    h = x
    for (w_ih, w_hh, b_ih, b_hh) in params["rnn_layers"]:
        S, B, _ = h.shape
        H = w_ih.shape[0]
        hs = jnp.zeros((B, H), jnp.float32)
        outs = []
        for t in range(S):
            hs = jnp.tanh(h[t] @ w_ih.T + b_ih + hs @ w_hh.T + b_hh)
            outs.append(hs)
        h = jnp.stack(outs, axis=0)
    return h @ params["fc_w"].T + params["fc_b"]


if __name__ == "__main__":
    seq_len, batch = 8, 2
    input_size, hidden_size, output_size = 4, 32, 4

    key = jax.random.PRNGKey(0)
    key, kx, kp = jax.random.split(key, 3)
    x = jax.random.normal(kx, (seq_len, batch, input_size), jnp.float32)
    params = init_params(kp, input_size, hidden_size, output_size)

    out = net_forward(x, params)
    out = jax.block_until_ready(out)

    ref = net_forward_ref(x, params)
    assert out.shape == (seq_len, batch, output_size), out.shape
    assert jnp.allclose(out, ref, atol=1e-5, rtol=1e-5), "mismatch vs reference"

    print("KERNEL_OK")
</pallas_src>

<mosaic_0001>
module attributes {stable_mosaic.version = 11 : i64} {
  func.func @_fused_net_kernel(%arg0: memref<8x2x4xf32, #tpu.memory_space<vmem>>, %arg1: memref<4x32xf32, #tpu.memory_space<vmem>>, %arg2: memref<3x32x32xf32, #tpu.memory_space<vmem>>, %arg3: memref<4x32x32xf32, #tpu.memory_space<vmem>>, %arg4: memref<4x1x32xf32, #tpu.memory_space<vmem>>, %arg5: memref<32x4xf32, #tpu.memory_space<vmem>>, %arg6: memref<1x4xf32, #tpu.memory_space<vmem>>, %arg7: memref<8x2x4xf32, #tpu.memory_space<vmem>>) attributes {dimension_semantics = [], scalar_prefetch = 0 : i64, scratch_operands = 0 : i64, tpu.core_type = #tpu.core_type<tc>} {
    %c0 = arith.constant 0 : index
    %c0_0 = arith.constant 0 : index
    %c0_1 = arith.constant 0 : index
    %0 = vector.load %arg0[%c0, %c0_0, %c0_1] : memref<8x2x4xf32, #tpu.memory_space<vmem>>, vector<8x2x4xf32>
    %1 = vector.shape_cast %0 : vector<8x2x4xf32> to vector<16x4xf32>
    %c0_2 = arith.constant 0 : index
    %c0_3 = arith.constant 0 : index
    %2 = vector.load %arg1[%c0_2, %c0_3] : memref<4x32xf32, #tpu.memory_space<vmem>>, vector<4x32xf32>
    %c0_4 = arith.constant 0 : index
    %c0_5 = arith.constant 0 : index
    %c0_6 = arith.constant 0 : index
    %3 = vector.load %arg3[%c0_4, %c0_5, %c0_6] : memref<4x32x32xf32, #tpu.memory_space<vmem>>, vector<1x32x32xf32>
    %4 = vector.shape_cast %3 : vector<1x32x32xf32> to vector<32x32xf32>
    %c0_7 = arith.constant 0 : index
    %c0_8 = arith.constant 0 : index
    %c0_9 = arith.constant 0 : index
    %5 = vector.load %arg4[%c0_7, %c0_8, %c0_9] : memref<4x1x32xf32, #tpu.memory_space<vmem>>, vector<1x1x32xf32>
    %6 = vector.shape_cast %5 : vector<1x1x32xf32> to vector<1x32xf32>
    %cst = arith.constant dense<0.000000e+00> : vector<16x32xf32>
    %7 = tpu.matmul %1, %2, %cst {dimension_numbers = #tpu.dot_dimension_numbers<[1], [0], [0], [1], [0, 0, 1, 1], [], []>} : vector<16x4xf32>, vector<4x32xf32>, vector<16x32xf32> -> vector<16x32xf32>
    %8 = vector.broadcast %6 : vector<1x32xf32> to vector<16x32xf32>
    %9 = arith.addf %7, %8 : vector<16x32xf32>
    %cst_10 = arith.constant 0.000000e+00 : f32
    %10 = vector.broadcast %cst_10 : f32 to vector<2x32xf32>
    %11 = vector.extract_strided_slice %9 {offsets = [0, 0], sizes = [2, 32], strides = [1, 1]} : vector<16x32xf32> to vector<2x32xf32>
    %cst_11 = arith.constant dense<0.000000e+00> : vector<2x32xf32>
    %12 = tpu.matmul %10, %4, %cst_11 {dimension_numbers = #tpu.dot_dimension_numbers<[1], [0], [0], [1], [0, 0, 1, 1], [], []>} : vector<2x32xf32>, vector<32x32xf32>, vector<2x32xf32> -> vector<2x32xf32>
    %13 = arith.addf %11, %12 : vector<2x32xf32>
    %14 = math.tanh %13 : vector<2x32xf32>
    %15 = vector.extract_strided_slice %9 {offsets = [2, 0], sizes = [2, 32], strides = [1, 1]} : vector<16x32xf32> to vector<2x32xf32>
    %cst_12 = arith.constant dense<0.000000e+00> : vector<2x32xf32>
    %16 = tpu.matmul %14, %4, %cst_12 {dimension_numbers = #tpu.dot_dimension_numbers<[1], [0], [0], [1], [0, 0, 1, 1], [], []>} : vector<2x32xf32>, vector<32x32xf32>, vector<2x32xf32> -> vector<2x32xf32>
    %17 = arith.addf %15, %16 : vector<2x32xf32>
    %18 = math.tanh %17 : vector<2x32xf32>
    %19 = vector.extract_strided_slice %9 {offsets = [4, 0], sizes = [2, 32], strides = [1, 1]} : vector<16x32xf32> to vector<2x32xf32>
    %cst_13 = arith.constant dense<0.000000e+00> : vector<2x32xf32>
    %20 = tpu.matmul %18, %4, %cst_13 {dimension_numbers = #tpu.dot_dimension_numbers<[1], [0], [0], [1], [0, 0, 1, 1], [], []>} : vector<2x32xf32>, vector<32x32xf32>, vector<2x32xf32> -> vector<2x32xf32>
    %21 = arith.addf %19, %20 : vector<2x32xf32>
    %22 = math.tanh %21 : vector<2x32xf32>
    %23 = vector.extract_strided_slice %9 {offsets = [6, 0], sizes = [2, 32], strides = [1, 1]} : vector<16x32xf32> to vector<2x32xf32>
    %cst_14 = arith.constant dense<0.000000e+00> : vector<2x32xf32>
    %24 = tpu.matmul %22, %4, %cst_14 {dimension_numbers = #tpu.dot_dimension_numbers<[1], [0], [0], [1], [0, 0, 1, 1], [], []>} : vector<2x32xf32>, vector<32x32xf32>, vector<2x32xf32> -> vector<2x32xf32>
    %25 = arith.addf %23, %24 : vector<2x32xf32>
    %26 = math.tanh %25 : vector<2x32xf32>
    %27 = vector.extract_strided_slice %9 {offsets = [8, 0], sizes = [2, 32], strides = [1, 1]} : vector<16x32xf32> to vector<2x32xf32>
    %cst_15 = arith.constant dense<0.000000e+00> : vector<2x32xf32>
    %28 = tpu.matmul %26, %4, %cst_15 {dimension_numbers = #tpu.dot_dimension_numbers<[1], [0], [0], [1], [0, 0, 1, 1], [], []>} : vector<2x32xf32>, vector<32x32xf32>, vector<2x32xf32> -> vector<2x32xf32>
    %29 = arith.addf %27, %28 : vector<2x32xf32>
    %30 = math.tanh %29 : vector<2x32xf32>
    %31 = vector.extract_strided_slice %9 {offsets = [10, 0], sizes = [2, 32], strides = [1, 1]} : vector<16x32xf32> to vector<2x32xf32>
    %cst_16 = arith.constant dense<0.000000e+00> : vector<2x32xf32>
    %32 = tpu.matmul %30, %4, %cst_16 {dimension_numbers = #tpu.dot_dimension_numbers<[1], [0], [0], [1], [0, 0, 1, 1], [], []>} : vector<2x32xf32>, vector<32x32xf32>, vector<2x32xf32> -> vector<2x32xf32>
    %33 = arith.addf %31, %32 : vector<2x32xf32>
    %34 = math.tanh %33 : vector<2x32xf32>
    %35 = vector.extract_strided_slice %9 {offsets = [12, 0], sizes = [2, 32], strides = [1, 1]} : vector<16x32xf32> to vector<2x32xf32>
    %cst_17 = arith.constant dense<0.000000e+00> : vector<2x32xf32>
    %36 = tpu.matmul %34, %4, %cst_17 {dimension_numbers = #tpu.dot_dimension_numbers<[1], [0], [0], [1], [0, 0, 1, 1], [], []>} : vector<2x32xf32>, vector<32x32xf32>, vector<2x32xf32> -> vector<2x32xf32>
    %37 = arith.addf %35, %36 : vector<2x32xf32>
    %38 = math.tanh %37 : vector<2x32xf32>
    %39 = vector.extract_strided_slice %9 {offsets = [14, 0], sizes = [2, 32], strides = [1, 1]} : vector<16x32xf32> to vector<2x32xf32>
    %cst_18 = arith.constant dense<0.000000e+00> : vector<2x32xf32>
    %40 = tpu.matmul %38, %4, %cst_18 {dimension_numbers = #tpu.dot_dimension_numbers<[1], [0], [0], [1], [0, 0, 1, 1], [], []>} : vector<2x32xf32>, vector<32x32xf32>, vector<2x32xf32> -> vector<2x32xf32>
    %41 = arith.addf %39, %40 : vector<2x32xf32>
    %42 = math.tanh %41 : vector<2x32xf32>
    %43 = tpu.concatenate %14, %18, %22, %26, %30, %34, %38, %42 in 0 : vector<2x32xf32>, vector<2x32xf32>, vector<2x32xf32>, vector<2x32xf32>, vector<2x32xf32>, vector<2x32xf32>, vector<2x32xf32>, vector<2x32xf32> -> vector<16x32xf32>
    %c0_19 = arith.constant 0 : index
    %c0_20 = arith.constant 0 : index
    %c0_21 = arith.constant 0 : index
    %44 = vector.load %arg2[%c0_19, %c0_20, %c0_21] : memref<3x32x32xf32, #tpu.memory_space<vmem>>, vector<1x32x32xf32>
    %45 = vector.shape_cast %44 : vector<1x32x32xf32> to vector<32x32xf32>
    %c1 = arith.constant 1 : index
    %c0_22 = arith.constant 0 : index
    %c0_23 = arith.constant 0 : index
    %46 = vector.load %arg3[%c1, %c0_22, %c0_23] : memref<4x32x32xf32, #tpu.memory_space<vmem>>, vector<1x32x32xf32>
    %47 = vector.shape_cast %46 : vector<1x32x32xf32> to vector<32x32xf32>
    %c1_24 = arith.constant 1 : index
    %c0_25 = arith.constant 0 : index
    %c0_26 = arith.constant 0 : index
    %48 = vector.load %arg4[%c1_24, %c0_25, %c0_26] : memref<4x1x32xf32, #tpu.memory_space<vmem>>, vector<1x1x32xf32>
    %49 = vector.shape_cast %48 : vector<1x1x32xf32> to vector<1x32xf32>
    %cst_27 = arith.constant dense<0.000000e+00> : vector<16x32xf32>
    %50 = tpu.matmul %43, %45, %cst_27 {dimension_numbers = #tpu.dot_dimension_numbers<[1], [0], [0], [1], [0, 0, 1, 1], [], []>} : vector<16x32xf32>, vector<32x32xf32>, vector<16x32xf32> -> vector<16x32xf32>
    %51 = vector.broadcast %49 : vector<1x32xf32> to vector<16x32xf32>
    %52 = arith.addf %50, %51 : vector<16x32xf32>
    %cst_28 = arith.constant 0.000000e+00 : f32
    %53 = vector.broadcast %cst_28 : f32 to vector<2x32xf32>
    %54 = vector.extract_strided_slice %52 {offsets = [0, 0], sizes = [2, 32], strides = [1, 1]} : vector<16x32xf32> to vector<2x32xf32>
    %cst_29 = arith.constant dense<0.000000e+00> : vector<2x32xf32>
    %55 = tpu.matmul %53, %47, %cst_29 {dimension_numbers = #tpu.dot_dimension_numbers<[1], [0], [0], [1], [0, 0, 1, 1], [], []>} : vector<2x32xf32>, vector<32x32xf32>, vector<2x32xf32> -> vector<2x32xf32>
    %56 = arith.addf %54, %55 : vector<2x32xf32>
    %57 = math.tanh %56 : vector<2x32xf32>
    %58 = vector.extract_strided_slice %52 {offsets = [2, 0], sizes = [2, 32], strides = [1, 1]} : vector<16x32xf32> to vector<2x32xf32>
    %cst_30 = arith.constant dense<0.000000e+00> : vector<2x32xf32>
    %59 = tpu.matmul %57, %47, %cst_30 {dimension_numbers = #tpu.dot_dimension_numbers<[1], [0], [0], [1], [0, 0, 1, 1], [], []>} : vector<2x32xf32>, vector<32x32xf32>, vector<2x32xf32> -> vector<2x32xf32>
    %60 = arith.addf %58, %59 : vector<2x32xf32>
    %61 = math.tanh %60 : vector<2x32xf32>
    %62 = vector.extract_strided_slice %52 {offsets = [4, 0], sizes = [2, 32], strides = [1, 1]} : vector<16x32xf32> to vector<2x32xf32>
    %cst_31 = arith.constant dense<0.000000e+00> : vector<2x32xf32>
    %63 = tpu.matmul %61, %47, %cst_31 {dimension_numbers = #tpu.dot_dimension_numbers<[1], [0], [0], [1], [0, 0, 1, 1], [], []>} : vector<2x32xf32>, vector<32x32xf32>, vector<2x32xf32> -> vector<2x32xf32>
    %64 = arith.addf %62, %63 : vector<2x32xf32>
    %65 = math.tanh %64 : vector<2x32xf32>
    %66 = vector.extract_strided_slice %52 {offsets = [6, 0], sizes = [2, 32], strides = [1, 1]} : vector<16x32xf32> to vector<2x32xf32>
    %cst_32 = arith.constant dense<0.000000e+00> : vector<2x32xf32>
    %67 = tpu.matmul %65, %47, %cst_32 {dimension_numbers = #tpu.dot_dimension_numbers<[1], [0], [0], [1], [0, 0, 1, 1], [], []>} : vector<2x32xf32>, vector<32x32xf32>, vector<2x32xf32> -> vector<2x32xf32>
    %68 = arith.addf %66, %67 : vector<2x32xf32>
    %69 = math.tanh %68 : vector<2x32xf32>
    %70 = vector.extract_strided_slice %52 {offsets = [8, 0], sizes = [2, 32], strides = [1, 1]} : vector<16x32xf32> to vector<2x32xf32>
    %cst_33 = arith.constant dense<0.000000e+00> : vector<2x32xf32>
    %71 = tpu.matmul %69, %47, %cst_33 {dimension_numbers = #tpu.dot_dimension_numbers<[1], [0], [0], [1], [0, 0, 1, 1], [], []>} : vector<2x32xf32>, vector<32x32xf32>, vector<2x32xf32> -> vector<2x32xf32>
    %72 = arith.addf %70, %71 : vector<2x32xf32>
    %73 = math.tanh %72 : vector<2x32xf32>
    %74 = vector.extract_strided_slice %52 {offsets = [10, 0], sizes = [2, 32], strides = [1, 1]} : vector<16x32xf32> to vector<2x32xf32>
    %cst_34 = arith.constant dense<0.000000e+00> : vector<2x32xf32>
    %75 = tpu.matmul %73, %47, %cst_34 {dimension_numbers = #tpu.dot_dimension_numbers<[1], [0], [0], [1], [0, 0, 1, 1], [], []>} : vector<2x32xf32>, vector<32x32xf32>, vector<2x32xf32> -> vector<2x32xf32>
    %76 = arith.addf %74, %75 : vector<2x32xf32>
    %77 = math.tanh %76 : vector<2x32xf32>
    %78 = vector.extract_strided_slice %52 {offsets = [12, 0], sizes = [2, 32], strides = [1, 1]} : vector<16x32xf32> to vector<2x32xf32>
    %cst_35 = arith.constant dense<0.000000e+00> : vector<2x32xf32>
    %79 = tpu.matmul %77, %47, %cst_35 {dimension_numbers = #tpu.dot_dimension_numbers<[1], [0], [0], [1], [0, 0, 1, 1], [], []>} : vector<2x32xf32>, vector<32x32xf32>, vector<2x32xf32> -> vector<2x32xf32>
    %80 = arith.addf %78, %79 : vector<2x32xf32>
    %81 = math.tanh %80 : vector<2x32xf32>
    %82 = vector.extract_strided_slice %52 {offsets = [14, 0], sizes = [2, 32], strides = [1, 1]} : vector<16x32xf32> to vector<2x32xf32>
    %cst_36 = arith.constant dense<0.000000e+00> : vector<2x32xf32>
    %83 = tpu.matmul %81, %47, %cst_36 {dimension_numbers = #tpu.dot_dimension_numbers<[1], [0], [0], [1], [0, 0, 1, 1], [], []>} : vector<2x32xf32>, vector<32x32xf32>, vector<2x32xf32> -> vector<2x32xf32>
    %84 = arith.addf %82, %83 : vector<2x32xf32>
    %85 = math.tanh %84 : vector<2x32xf32>
    %86 = tpu.concatenate %57, %61, %65, %69, %73, %77, %81, %85 in 0 : vector<2x32xf32>, vector<2x32xf32>, vector<2x32xf32>, vector<2x32xf32>, vector<2x32xf32>, vector<2x32xf32>, vector<2x32xf32>, vector<2x32xf32> -> vector<16x32xf32>
    %c1_37 = arith.constant 1 : index
    %c0_38 = arith.constant 0 : index
    %c0_39 = arith.constant 0 : index
    %87 = vector.load %arg2[%c1_37, %c0_38, %c0_39] : memref<3x32x32xf32, #tpu.memory_space<vmem>>, vector<1x32x32xf32>
    %88 = vector.shape_cast %87 : vector<1x32x32xf32> to vector<32x32xf32>
    %c2 = arith.constant 2 : index
    %c0_40 = arith.constant 0 : index
    %c0_41 = arith.constant 0 : index
    %89 = vector.load %arg3[%c2, %c0_40, %c0_41] : memref<4x32x32xf32, #tpu.memory_space<vmem>>, vector<1x32x32xf32>
    %90 = vector.shape_cast %89 : vector<1x32x32xf32> to vector<32x32xf32>
    %c2_42 = arith.constant 2 : index
    %c0_43 = arith.constant 0 : index
    %c0_44 = arith.constant 0 : index
    %91 = vector.load %arg4[%c2_42, %c0_43, %c0_44] : memref<4x1x32xf32, #tpu.memory_space<vmem>>, vector<1x1x32xf32>
    %92 = vector.shape_cast %91 : vector<1x1x32xf32> to vector<1x32xf32>
    %cst_45 = arith.constant dense<0.000000e+00> : vector<16x32xf32>
    %93 = tpu.matmul %86, %88, %cst_45 {dimension_numbers = #tpu.dot_dimension_numbers<[1], [0], [0], [1], [0, 0, 1, 1], [], []>} : vector<16x32xf32>, vector<32x32xf32>, vector<16x32xf32> -> vector<16x32xf32>
    %94 = vector.broadcast %92 : vector<1x32xf32> to vector<16x32xf32>
    %95 = arith.addf %93, %94 : vector<16x32xf32>
    %cst_46 = arith.constant 0.000000e+00 : f32
    %96 = vector.broadcast %cst_46 : f32 to vector<2x32xf32>
    %97 = vector.extract_strided_slice %95 {offsets = [0, 0], sizes = [2, 32], strides = [1, 1]} : vector<16x32xf32> to vector<2x32xf32>
    %cst_47 = arith.constant dense<0.000000e+00> : vector<2x32xf32>
    %98 = tpu.matmul %96, %90, %cst_47 {dimension_numbers = #tpu.dot_dimension_numbers<[1], [0], [0], [1], [0, 0, 1, 1], [], []>} : vector<2x32xf32>, vector<32x32xf32>, vector<2x32xf32> -> vector<2x32xf32>
    %99 = arith.addf %97, %98 : vector<2x32xf32>
    %100 = math.tanh %99 : vector<2x32xf32>
    %101 = vector.extract_strided_slice %95 {offsets = [2, 0], sizes = [2, 32], strides = [1, 1]} : vector<16x32xf32> to vector<2x32xf32>
    %cst_48 = arith.constant dense<0.000000e+00> : vector<2x32xf32>
    %102 = tpu.matmul %100, %90, %cst_48 {dimension_numbers = #tpu.dot_dimension_numbers<[1], [0], [0], [1], [0, 0, 1, 1], [], []>} : vector<2x32xf32>, vector<32x32xf32>, vector<2x32xf32> -> vector<2x32xf32>
    %103 = arith.addf %101, %102 : vector<2x32xf32>
    %104 = math.tanh %103 : vector<2x32xf32>
    %105 = vector.extract_strided_slice %95 {offsets = [4, 0], sizes = [2, 32], strides = [1, 1]} : vector<16x32xf32> to vector<2x32xf32>
    %cst_49 = arith.constant dense<0.000000e+00> : vector<2x32xf32>
    %106 = tpu.matmul %104, %90, %cst_49 {dimension_numbers = #tpu.dot_dimension_numbers<[1], [0], [0], [1], [0, 0, 1, 1], [], []>} : vector<2x32xf32>, vector<32x32xf32>, vector<2x32xf32> -> vector<2x32xf32>
    %107 = arith.addf %105, %106 : vector<2x32xf32>
    %108 = math.tanh %107 : vector<2x32xf32>
    %109 = vector.extract_strided_slice %95 {offsets = [6, 0], sizes = [2, 32], strides = [1, 1]} : vector<16x32xf32> to vector<2x32xf32>
    %cst_50 = arith.constant dense<0.000000e+00> : vector<2x32xf32>
    %110 = tpu.matmul %108, %90, %cst_50 {dimension_numbers = #tpu.dot_dimension_numbers<[1], [0], [0], [1], [0, 0, 1, 1], [], []>} : vector<2x32xf32>, vector<32x32xf32>, vector<2x32xf32> -> vector<2x32xf32>
    %111 = arith.addf %109, %110 : vector<2x32xf32>
    %112 = math.tanh %111 : vector<2x32xf32>
    %113 = vector.extract_strided_slice %95 {offsets = [8, 0], sizes = [2, 32], strides = [1, 1]} : vector<16x32xf32> to vector<2x32xf32>
    %cst_51 = arith.constant dense<0.000000e+00> : vector<2x32xf32>
    %114 = tpu.matmul %112, %90, %cst_51 {dimension_numbers = #tpu.dot_dimension_numbers<[1], [0], [0], [1], [0, 0, 1, 1], [], []>} : vector<2x32xf32>, vector<32x32xf32>, vector<2x32xf32> -> vector<2x32xf32>
    %115 = arith.addf %113, %114 : vector<2x32xf32>
    %116 = math.tanh %115 : vector<2x32xf32>
    %117 = vector.extract_strided_slice %95 {offsets = [10, 0], sizes = [2, 32], strides = [1, 1]} : vector<16x32xf32> to vector<2x32xf32>
    %cst_52 = arith.constant dense<0.000000e+00> : vector<2x32xf32>
    %118 = tpu.matmul %116, %90, %cst_52 {dimension_numbers = #tpu.dot_dimension_numbers<[1], [0], [0], [1], [0, 0, 1, 1], [], []>} : vector<2x32xf32>, vector<32x32xf32>, vector<2x32xf32> -> vector<2x32xf32>
    %119 = arith.addf %117, %118 : vector<2x32xf32>
    %120 = math.tanh %119 : vector<2x32xf32>
    %121 = vector.extract_strided_slice %95 {offsets = [12, 0], sizes = [2, 32], strides = [1, 1]} : vector<16x32xf32> to vector<2x32xf32>
    %cst_53 = arith.constant dense<0.000000e+00> : vector<2x32xf32>
    %122 = tpu.matmul %120, %90, %cst_53 {dimension_numbers = #tpu.dot_dimension_numbers<[1], [0], [0], [1], [0, 0, 1, 1], [], []>} : vector<2x32xf32>, vector<32x32xf32>, vector<2x32xf32> -> vector<2x32xf32>
    %123 = arith.addf %121, %122 : vector<2x32xf32>
    %124 = math.tanh %123 : vector<2x32xf32>
    %125 = vector.extract_strided_slice %95 {offsets = [14, 0], sizes = [2, 32], strides = [1, 1]} : vector<16x32xf32> to vector<2x32xf32>
    %cst_54 = arith.constant dense<0.000000e+00> : vector<2x32xf32>
    %126 = tpu.matmul %124, %90, %cst_54 {dimension_numbers = #tpu.dot_dimension_numbers<[1], [0], [0], [1], [0, 0, 1, 1], [], []>} : vector<2x32xf32>, vector<32x32xf32>, vector<2x32xf32> -> vector<2x32xf32>
    %127 = arith.addf %125, %126 : vector<2x32xf32>
    %128 = math.tanh %127 : vector<2x32xf32>
    %129 = tpu.concatenate %100, %104, %108, %112, %116, %120, %124, %128 in 0 : vector<2x32xf32>, vector<2x32xf32>, vector<2x32xf32>, vector<2x32xf32>, vector<2x32xf32>, vector<2x32xf32>, vector<2x32xf32>, vector<2x32xf32> -> vector<16x32xf32>
    %c2_55 = arith.constant 2 : index
    %c0_56 = arith.constant 0 : index
    %c0_57 = arith.constant 0 : index
    %130 = vector.load %arg2[%c2_55, %c0_56, %c0_57] : memref<3x32x32xf32, #tpu.memory_space<vmem>>, vector<1x32x32xf32>
    %131 = vector.shape_cast %130 : vector<1x32x32xf32> to vector<32x32xf32>
    %c3 = arith.constant 3 : index
    %c0_58 = arith.constant 0 : index
    %c0_59 = arith.constant 0 : index
    %132 = vector.load %arg3[%c3, %c0_58, %c0_59] : memref<4x32x32xf32, #tpu.memory_space<vmem>>, vector<1x32x32xf32>
    %133 = vector.shape_cast %132 : vector<1x32x32xf32> to vector<32x32xf32>
    %c3_60 = arith.constant 3 : index
    %c0_61 = arith.constant 0 : index
    %c0_62 = arith.constant 0 : index
    %134 = vector.load %arg4[%c3_60, %c0_61, %c0_62] : memref<4x1x32xf32, #tpu.memory_space<vmem>>, vector<1x1x32xf32>
    %135 = vector.shape_cast %134 : vector<1x1x32xf32> to vector<1x32xf32>
    %cst_63 = arith.constant dense<0.000000e+00> : vector<16x32xf32>
    %136 = tpu.matmul %129, %131, %cst_63 {dimension_numbers = #tpu.dot_dimension_numbers<[1], [0], [0], [1], [0, 0, 1, 1], [], []>} : vector<16x32xf32>, vector<32x32xf32>, vector<16x32xf32> -> vector<16x32xf32>
    %137 = vector.broadcast %135 : vector<1x32xf32> to vector<16x32xf32>
    %138 = arith.addf %136, %137 : vector<16x32xf32>
    %cst_64 = arith.constant 0.000000e+00 : f32
    %139 = vector.broadcast %cst_64 : f32 to vector<2x32xf32>
    %140 = vector.extract_strided_slice %138 {offsets = [0, 0], sizes = [2, 32], strides = [1, 1]} : vector<16x32xf32> to vector<2x32xf32>
    %cst_65 = arith.constant dense<0.000000e+00> : vector<2x32xf32>
    %141 = tpu.matmul %139, %133, %cst_65 {dimension_numbers = #tpu.dot_dimension_numbers<[1], [0], [0], [1], [0, 0, 1, 1], [], []>} : vector<2x32xf32>, vector<32x32xf32>, vector<2x32xf32> -> vector<2x32xf32>
    %142 = arith.addf %140, %141 : vector<2x32xf32>
    %143 = math.tanh %142 : vector<2x32xf32>
    %144 = vector.extract_strided_slice %138 {offsets = [2, 0], sizes = [2, 32], strides = [1, 1]} : vector<16x32xf32> to vector<2x32xf32>
    %cst_66 = arith.constant dense<0.000000e+00> : vector<2x32xf32>
    %145 = tpu.matmul %143, %133, %cst_66 {dimension_numbers = #tpu.dot_dimension_numbers<[1], [0], [0], [1], [0, 0, 1, 1], [], []>} : vector<2x32xf32>, vector<32x32xf32>, vector<2x32xf32> -> vector<2x32xf32>
    %146 = arith.addf %144, %145 : vector<2x32xf32>
    %147 = math.tanh %146 : vector<2x32xf32>
    %148 = vector.extract_strided_slice %138 {offsets = [4, 0], sizes = [2, 32], strides = [1, 1]} : vector<16x32xf32> to vector<2x32xf32>
    %cst_67 = arith.constant dense<0.000000e+00> : vector<2x32xf32>
    %149 = tpu.matmul %147, %133, %cst_67 {dimension_numbers = #tpu.dot_dimension_numbers<[1], [0], [0], [1], [0, 0, 1, 1], [], []>} : vector<2x32xf32>, vector<32x32xf32>, vector<2x32xf32> -> vector<2x32xf32>
    %150 = arith.addf %148, %149 : vector<2x32xf32>
    %151 = math.tanh %150 : vector<2x32xf32>
    %152 = vector.extract_strided_slice %138 {offsets = [6, 0], sizes = [2, 32], strides = [1, 1]} : vector<16x32xf32> to vector<2x32xf32>
    %cst_68 = arith.constant dense<0.000000e+00> : vector<2x32xf32>
    %153 = tpu.matmul %151, %133, %cst_68 {dimension_numbers = #tpu.dot_dimension_numbers<[1], [0], [0], [1], [0, 0, 1, 1], [], []>} : vector<2x32xf32>, vector<32x32xf32>, vector<2x32xf32> -> vector<2x32xf32>
    %154 = arith.addf %152, %153 : vector<2x32xf32>
    %155 = math.tanh %154 : vector<2x32xf32>
    %156 = vector.extract_strided_slice %138 {offsets = [8, 0], sizes = [2, 32], strides = [1, 1]} : vector<16x32xf32> to vector<2x32xf32>
    %cst_69 = arith.constant dense<0.000000e+00> : vector<2x32xf32>
    %157 = tpu.matmul %155, %133, %cst_69 {dimension_numbers = #tpu.dot_dimension_numbers<[1], [0], [0], [1], [0, 0, 1, 1], [], []>} : vector<2x32xf32>, vector<32x32xf32>, vector<2x32xf32> -> vector<2x32xf32>
    %158 = arith.addf %156, %157 : vector<2x32xf32>
    %159 = math.tanh %158 : vector<2x32xf32>
    %160 = vector.extract_strided_slice %138 {offsets = [10, 0], sizes = [2, 32], strides = [1, 1]} : vector<16x32xf32> to vector<2x32xf32>
    %cst_70 = arith.constant dense<0.000000e+00> : vector<2x32xf32>
    %161 = tpu.matmul %159, %133, %cst_70 {dimension_numbers = #tpu.dot_dimension_numbers<[1], [0], [0], [1], [0, 0, 1, 1], [], []>} : vector<2x32xf32>, vector<32x32xf32>, vector<2x32xf32> -> vector<2x32xf32>
    %162 = arith.addf %160, %161 : vector<2x32xf32>
    %163 = math.tanh %162 : vector<2x32xf32>
    %164 = vector.extract_strided_slice %138 {offsets = [12, 0], sizes = [2, 32], strides = [1, 1]} : vector<16x32xf32> to vector<2x32xf32>
    %cst_71 = arith.constant dense<0.000000e+00> : vector<2x32xf32>
    %165 = tpu.matmul %163, %133, %cst_71 {dimension_numbers = #tpu.dot_dimension_numbers<[1], [0], [0], [1], [0, 0, 1, 1], [], []>} : vector<2x32xf32>, vector<32x32xf32>, vector<2x32xf32> -> vector<2x32xf32>
    %166 = arith.addf %164, %165 : vector<2x32xf32>
    %167 = math.tanh %166 : vector<2x32xf32>
    %168 = vector.extract_strided_slice %138 {offsets = [14, 0], sizes = [2, 32], strides = [1, 1]} : vector<16x32xf32> to vector<2x32xf32>
    %cst_72 = arith.constant dense<0.000000e+00> : vector<2x32xf32>
    %169 = tpu.matmul %167, %133, %cst_72 {dimension_numbers = #tpu.dot_dimension_numbers<[1], [0], [0], [1], [0, 0, 1, 1], [], []>} : vector<2x32xf32>, vector<32x32xf32>, vector<2x32xf32> -> vector<2x32xf32>
    %170 = arith.addf %168, %169 : vector<2x32xf32>
    %171 = math.tanh %170 : vector<2x32xf32>
    %172 = tpu.concatenate %143, %147, %151, %155, %159, %163, %167, %171 in 0 : vector<2x32xf32>, vector<2x32xf32>, vector<2x32xf32>, vector<2x32xf32>, vector<2x32xf32>, vector<2x32xf32>, vector<2x32xf32>, vector<2x32xf32> -> vector<16x32xf32>
    %c0_73 = arith.constant 0 : index
    %c0_74 = arith.constant 0 : index
    %173 = vector.load %arg5[%c0_73, %c0_74] : memref<32x4xf32, #tpu.memory_space<vmem>>, vector<32x4xf32>
    %cst_75 = arith.constant dense<0.000000e+00> : vector<16x4xf32>
    %174 = tpu.matmul %172, %173, %cst_75 {dimension_numbers = #tpu.dot_dimension_numbers<[1], [0], [0], [1], [0, 0, 1, 1], [], []>} : vector<16x32xf32>, vector<32x4xf32>, vector<16x4xf32> -> vector<16x4xf32>
    %c0_76 = arith.constant 0 : index
    %c0_77 = arith.constant 0 : index
    %175 = vector.load %arg6[%c0_76, %c0_77] : memref<1x4xf32, #tpu.memory_space<vmem>>, vector<1x4xf32>
    %176 = vector.broadcast %175 : vector<1x4xf32> to vector<16x4xf32>
    %177 = arith.addf %174, %176 : vector<16x4xf32>
    %178 = vector.shape_cast %177 : vector<16x4xf32> to vector<8x2x4xf32>
    %c0_78 = arith.constant 0 : index
    %c0_79 = arith.constant 0 : index
    %c0_80 = arith.constant 0 : index
    %179 = vector.load %arg7[%c0_78, %c0_79, %c0_80] : memref<8x2x4xf32, #tpu.memory_space<vmem>>, vector<8x2x4xf32>
    tpu.vector_store %arg7[%c0_78, %c0_79, %c0_80], %178 {strides = array<i32>} : memref<8x2x4xf32, #tpu.memory_space<vmem>>, vector<8x2x4xf32>,
    return
  }
}

</mosaic_0001>

<bundles_post_ra>
// kernel: tpu_custom_call.1
= control target key start
LH: loop header
LB: loop body
LE: loop exit
PB: predicated region body
PF: predicated region fallthrough
CT: control target
= control target key end

     0   :  { %12 = vsyncpa [#allocation3], 0  ;;  %s4498_s0 = inlined_call_operand.vmem [shape: f32[8,2,4], index: 0, kind: input, shape index: {}]   ;;  %s4499_s1 = inlined_call_operand.vmem [shape: f32[4,32], index: 1, kind: input, shape index: {}]   ;;  %s4500_s2 = inlined_call_operand.hbm [shape: f32[3,32,32], index: 2, kind: input, shape index: {}]   ;;  %s4501_s3 = inlined_call_operand.hbm [shape: f32[4,32,32], index: 3, kind: input, shape index: {}]   ;;  %s4502_s4 = inlined_call_operand.vmem [shape: f32[4,1,32], index: 4, kind: input, shape index: {}]   ;;  %s4503_s5 = inlined_call_operand.vmem [shape: f32[32,4], index: 5, kind: input, shape index: {}]   ;;  %s4504_s6 = inlined_call_operand.vmem [shape: f32[1,4], index: 6, kind: input, shape index: {}]   ;;  %s4505_s7 = inlined_call_operand.vmem [shape: f32[8,2,4], index: 7, kind: output, shape index: {}]  }
   0x1   :  { %13 = vsyncpa [#allocation5], 0  ;;  %s3907_s24 = smov [#allocation2]  }
   0x2   :  { %s23_s25 = sshll.u32 %s3907_s24, 4  ;;  %s24_s25 = int_to_ptr.vmem [resolvable:$true] %s23_s25 }
   0x3   :  { %s3871_s26 = scalar_lea.vmem %s24_s25, 1536  ;;  %p3876_p1 = scmp.lt.s32.totalorder %s24_s25, %s24_s25 }
   0x4   :  { %p3872_p0 = scmp.ne.s32.totalorder %s24_s25, %s3871_s26  ;;  %p3877_p2 = scmp.lt.s32.totalorder %s3871_s26, %s3871_s26 }
   0x6   :  { %p3878_p3 = por %p3877_p2, %p3876_p1 }
   0x8   :  { %p3879_p4 = pnand %p3878_p3, %p3872_p0 }
   0xa   :  { %3882 = shalt.err (!%p3879_p4)
}
   0xb   :  { %s3908_s27 = smov 128   ;;  %s3909_s28 = smov 8  }
   0xc   :  { %29 = dma.hbm_to_vmem [thread:$0]  %s4500_s2, 1536, %s24_s25, [#allocation3], %s3908_s27, %s3908_s27, %s3909_s28  }
   0xd   :  { %s3910_s8 = smov [#allocation4]  }
   0xe   :  { %s35_s9 = sshll.u32 %s3910_s8, 4  ;;  %s36_s9 = int_to_ptr.vmem [resolvable:$true] %s35_s9 }
   0xf   :  { %s3891_s10 = scalar_lea.vmem %s36_s9, 2048  ;;  %p3896_p6 = scmp.lt.s32.totalorder %s36_s9, %s36_s9 }
  0x10   :  { %p3892_p5 = scmp.ne.s32.totalorder %s36_s9, %s3891_s10  ;;  %p3897_p7 = scmp.lt.s32.totalorder %s3891_s10, %s3891_s10 }
  0x12   :  { %p3898_p8 = por %p3897_p7, %p3896_p6 }
  0x14   :  { %p3899_p9 = pnand %p3898_p8, %p3892_p5 }
  0x16   :  { %3902 = shalt.err (!%p3899_p9)
}
  0x17   :  { %41 = dma.hbm_to_vmem [thread:$0]  %s4501_s3, 2048, %s36_s9, [#allocation5], %s3908_s27, %s3908_s27, %s3909_s28  }
  0x18   :  { %3903 = dma.done.wait [#allocation3], 1536  }
  0x19   :  { %3904 = vsyncadd [#allocation3], 4294965760 }
  0x1a   :  { %3905 = dma.done.wait [#allocation5], 2048  }
  0x1b   :  { %3906 = vsyncadd [#allocation5], 4294965248  ;;  %v87_v0 = vlaneseq  ;;  %v3911_v1 = vmov 0.0   ;;  %v3912_v2 = vmov 1983009808   ;;  %vm3913_vm0 = vmmov 0  }
  0x1c   :  { %3396 = vmatprep.subr.mxu1 %v3911_v1  ;;  %v85_v3 = vunpack.c.l.s4 %v3912_v2  ;;  %3404 = vmatprep.mubr.msk.f32.mxu1 %vm3913_vm0, %v3911_v1  ;;  %vm121_vm1 = vcmask 1043456   ;;  %v3963_v6 = vld [vmem:[#allocation4 + $0x18] sm:$0xff]  ;;  %v3965_v7 = vld [vmem:[#allocation4 + $0x10] sm:$0xff]  ;;  %v62_v8 = vld [vmem:[%s4499_s1] sm:$0xf]  ;;  %vm116_vm2 = vcmask 31744  }
  0x1d   :  { %v88_v5 = vshrl.u32 %v87_v0, 7  ;;  %3397 = vmatpush3.msra.mxu1 %v3963_v6  ;;  %3391 = vmatprep.subr.msk.mxu0 %vm121_vm1, %v62_v8  ;;  %v54_v10 = vld [vmem:[%s4498_s0] sm:$0x3]  ;;  %v55_v11 = vld [vmem:[%s4498_s0 + $0x2] sm:$0x3]  ;;  %v3988_v15 = vld [vmem:[#allocation4 + $0x8] sm:$0xff] }
  0x1e   :  { %v86_v4 = vunpack.c.0.s8 %v85_v3  ;;  %v56_v12 = vld [vmem:[%s4498_s0 + $0x4] sm:$0x3]  ;;  %3398 = vmatprep.subr.mxu1 %v3911_v1  ;;  %3392 = vmatpush3.msk.msra.mxu0 %vm121_vm1, %v62_v8  ;;  %v57_v13 = vld [vmem:[%s4498_s0 + $0x6] sm:$0x3]  ;;  %v82_v14 = vcombine.low %v54_v10, %v55_v11  ;;  %v58_v16 = vld [vmem:[%s4498_s0 + $0x8] sm:$0x3] }
  0x1f   :  { %3399 = vmatpush3.msra.mxu1 %v3965_v7  ;;  %v83_v17 = vcombine.low %v56_v12, %v57_v13  ;;  %v59_v18 = vld [vmem:[%s4498_s0 + $0xa] sm:$0x3]  ;;  %v60_v19 = vld [vmem:[%s4498_s0 + $0xc] sm:$0x3]  ;;  %v61_v20 = vld [vmem:[%s4498_s0 + $0xe] sm:$0x3]  ;;  %3407 = vmatprep.subr.mxu0 %v3911_v1 }
  0x20   :  { %v3970_v9 = vsub.s32 %v86_v4, %v88_v5  ;;  %3400 = vmatprep.subr.mxu1 %v3911_v1  ;;  %v99_v22 = vcombine.low %v58_v16, %v59_v18  ;;  %v100_v23 = vcombine.low %v60_v19, %v61_v20  ;;  %v4006_v24 = vld [vmem:[#allocation4] sm:$0xff]  ;;  %vm200_vm3 = vcmask 261120   ;;  %v835_v16 = vld [vmem:[#allocation2 + $0x18] sm:$0xff]  ;;  %v4111_v19 = vld [vmem:[#allocation4 + $0x30] sm:$0xff] }
  0x21   :  { %3401 = vmatpush3.msra.mxu1 %v3988_v15  ;;  %v3157_v30 = vld [vmem:[%s4502_s4] ss:$0 sm:$0xff]  ;;  %vm824_vm4 = vcmask 1041408   ;;  %vm827_vm5 = vcmask 1045504   ;;  %v4108_v18 = vld [vmem:[#allocation4 + $0x38] sm:$0xff]  ;;  %v833_v20 = vld [vmem:[#allocation2 + $0x8] sm:$0xff] }
  0x22   :  { %v90_v21 = vrot.slane %v82_v14, %v3970_v9  ;;  %v97_v25 = vrot.slane %v83_v17, %v3970_v9  ;;  %v107_v26 = vrot.slane %v99_v22, %v3970_v9  ;;  %v114_v27 = vrot.slane %v100_v23, %v3970_v9  ;;  %3402 = vmatprep.subr.mxu1 %v3911_v1  ;;  %v834_v17 = vld [vmem:[#allocation2 + $0x10] sm:$0xff]  ;;  %v832_v22 = vld [vmem:[#allocation2] sm:$0xff] }
  0x23   :  { %3403 = vmatpush3.msra.mxu1 %v4006_v24  ;;  %v4121_v23 = vld [vmem:[#allocation4 + $0x20] sm:$0xff]  ;;  %vm3142_vm6 = vcmask 25600  }
  0x24   :  { %v98_v28 = vcombine.low %v90_v21, %v97_v25  ;;  %v115_v29 = vcombine.low %v107_v26, %v114_v27  ;;  %3405 = vmatmul.mubr.f32.vlgmr.msra.gmra.mxu1 %v3911_v1  ;;  %3418 = vmatprep.subr.mxu1 %v3911_v1  ;;  %v4114_v21 = vld [vmem:[#allocation4 + $0x28] sm:$0xff] }
  0x25   :  { %3419 = vmatpush3.msra.mxu1 %v3963_v6  ;;  %3426 = vmatprep.mubr.msk.f32.mxu1 %vm3913_vm0, %v3911_v1 }
  0x26   :  { %3393 = vmatprep.mubr.msk.f32.mxu0 %vm116_vm2, %v98_v28  ;;  %3420 = vmatprep.subr.mxu1 %v3911_v1 }
  0x27   :  { %3394 = vmatmul.mubr.msk.f32.vlgmr.msra.gmra.mxu0 %vm116_vm2, %v115_v29  ;;  %3421 = vmatpush3.msra.mxu1 %v3965_v7 }
  0x28   :  { %3408 = vmatpush3.msra.mxu0 %v3963_v6  ;;  %3415 = vmatprep.mubr.msk.f32.mxu0 %vm3913_vm0, %v3911_v1 }
  0x29   :  { %3409 = vmatprep.subr.mxu0 %v3911_v1  ;;  %3422 = vmatprep.subr.mxu1 %v3911_v1 }
  0x2a   :  { %3410 = vmatpush3.msra.mxu0 %v3965_v7  ;;  %3423 = vmatpush3.msra.mxu1 %v3988_v15 }
  0x2b   :  { %3411 = vmatprep.subr.mxu0 %v3911_v1  ;;  %3424 = vmatprep.subr.mxu1 %v3911_v1 }
  0x2c   :  { %3412 = vmatpush3.msra.mxu0 %v3988_v15  ;;  %3425 = vmatpush3.msra.mxu1 %v4006_v24 }
  0x2d   :  { %3413 = vmatprep.subr.mxu0 %v3911_v1  ;;  %3440 = vmatprep.subr.mxu1 %v3911_v1 }
  0x2e   :  { %3414 = vmatpush3.msra.mxu0 %v4006_v24 }
  0x2f   :  { %3429 = vmatprep.subr.mxu0 %v3911_v1 }
  0xe4   :  { %v270_v31 = vpop.f32.mrf.mxu1 }
  0xe6   :  { %v3406_v33 = vpop.f32.mrf.mxu1 }
  0xe7   :  { %v3395_v32 = vpop.f32.mrf.mxu0 }
  0xe8   :  { %v4039_v34 = vadd.f32 %v3395_v32, %v3157_v30  ;;  %v3169_v32 = vld [vmem:[%s4502_s4 + $0x1] ss:$0 sm:$0xff] }
  0xe9   :  { %v191_v35 = vpop.f32.mrf.mxu0 }
  0xea   :  { %v192_v36 = vadd.f32 %v3157_v30, %v191_v35 }
  0xec   :  { %v274_v37 = vadd.f32 %v270_v31, %v192_v36 }
  0xee   :  { %3799 = vtanh.f32 %v274_v37 }
  0xfb   :  { %v3800_v38 = vpop.eup %3799 }
  0xfc   :  { %3416 = vmatmul.mubr.msk.f32.vlgmr.msra.gmra.mxu0 %vm200_vm3, %v3800_v38 }
  0xfd   :  { %3430 = vmatpush3.msra.mxu0 %v3963_v6  ;;  %3437 = vmatprep.mubr.msk.f32.mxu0 %vm3913_vm0, %v3911_v1 }
  0xfe   :  { %3431 = vmatprep.subr.mxu0 %v3911_v1 }
  0xff   :  { %3432 = vmatpush3.msra.mxu0 %v3965_v7 }
 0x100   :  { %3433 = vmatprep.subr.mxu0 %v3911_v1 }
 0x101   :  { %3434 = vmatpush3.msra.mxu0 %v3988_v15 }
 0x102   :  { %3435 = vmatprep.subr.mxu0 %v3911_v1 }
 0x103   :  { %3436 = vmatpush3.msra.mxu0 %v4006_v24 }
 0x104   :  { %3451 = vmatprep.subr.mxu0 %v3911_v1 }
 0x1bc   :  { %v345_v39 = vpop.f32.mrf.mxu0 }
 0x1bd   :  { %v350_v40 = vrot.slane %v345_v39, 6 }
 0x1be   :  { %v3417_v41 = vpop.f32.mrf.mxu0 }
 0x1bf   :  { %v352_v42 = vadd.f32 %v350_v40, %v192_v36 }
 0x1c1   :  { %3801 = vtanh.f32 %v352_v42 }
 0x1ce   :  { %v3802_v43 = vpop.eup %3801 }
 0x1cf   :  { %v355_v44 = vrot.slane %v3802_v43, 2  ;;  %v825_v50 = vsel %vm824_vm4, %v3800_v38, %v3802_v43 }
 0x1d1   :  { %3427 = vmatmul.mubr.msk.f32.vlgmr.msra.gmra.mxu1 %vm200_vm3, %v355_v44 }
 0x1d2   :  { %3441 = vmatpush3.msra.mxu1 %v3963_v6  ;;  %3448 = vmatprep.mubr.msk.f32.mxu1 %vm3913_vm0, %v3911_v1 }
 0x1d3   :  { %3442 = vmatprep.subr.mxu1 %v3911_v1 }
 0x1d4   :  { %3443 = vmatpush3.msra.mxu1 %v3965_v7 }
 0x1d5   :  { %3444 = vmatprep.subr.mxu1 %v3911_v1 }
 0x1d6   :  { %3445 = vmatpush3.msra.mxu1 %v3988_v15 }
 0x1d7   :  { %3446 = vmatprep.subr.mxu1 %v3911_v1 }
 0x1d8   :  { %3447 = vmatpush3.msra.mxu1 %v4006_v24 }
 0x1d9   :  { %3462 = vmatprep.subr.mxu1 %v3911_v1 }
 0x291   :  { %v424_v45 = vpop.f32.mrf.mxu1 }
 0x292   :  { %v429_v46 = vrot.slane %v424_v45, 4 }
 0x293   :  { %v3428_v47 = vpop.f32.mrf.mxu1 }
 0x294   :  { %v431_v48 = vadd.f32 %v429_v46, %v192_v36 }
 0x296   :  { %3803 = vtanh.f32 %v431_v48 }
 0x2a3   :  { %v3804_v49 = vpop.eup %3803 }
 0x2a4   :  { %v434_v51 = vrot.slane %v3804_v49, 4  ;;  %v826_v52 = vsel %vm121_vm1, %v825_v50, %v3804_v49 }
 0x2a6   :  { %3438 = vmatmul.mubr.msk.f32.vlgmr.msra.gmra.mxu0 %vm200_vm3, %v434_v51 }
 0x2a7   :  { %3452 = vmatpush3.msra.mxu0 %v3963_v6  ;;  %3459 = vmatprep.mubr.msk.f32.mxu0 %vm3913_vm0, %v3911_v1 }
 0x2a8   :  { %3453 = vmatprep.subr.mxu0 %v3911_v1 }
 0x2a9   :  { %3454 = vmatpush3.msra.mxu0 %v3965_v7 }
 0x2aa   :  { %3455 = vmatprep.subr.mxu0 %v3911_v1 }
 0x2ab   :  { %3456 = vmatpush3.msra.mxu0 %v3988_v15 }
 0x2ac   :  { %3457 = vmatprep.subr.mxu0 %v3911_v1 }
 0x2ad   :  { %3458 = vmatpush3.msra.mxu0 %v4006_v24 }
 0x2ae   :  { %3473 = vmatprep.subr.mxu0 %v3911_v1 }
 0x366   :  { %v503_v53 = vpop.f32.mrf.mxu0 }
 0x367   :  { %v508_v54 = vrot.slane %v503_v53, 2 }
 0x368   :  { %v3439_v55 = vpop.f32.mrf.mxu0 }
 0x369   :  { %v510_v56 = vadd.f32 %v508_v54, %v192_v36 }
 0x36b   :  { %3805 = vtanh.f32 %v510_v56 }
 0x378   :  { %v3806_v57 = vpop.eup %3805 }
 0x379   :  { %v513_v58 = vrot.slane %v3806_v57, 6  ;;  %v828_v59 = vsel %vm827_vm5, %v826_v52, %v3806_v57 }
 0x37b   :  { %3449 = vmatmul.mubr.msk.f32.vlgmr.msra.gmra.mxu1 %vm200_vm3, %v513_v58 }
 0x37c   :  { %3463 = vmatpush3.msra.mxu1 %v3963_v6  ;;  %3470 = vmatprep.mubr.msk.f32.mxu1 %vm3913_vm0, %v3911_v1 }
 0x37d   :  { %3464 = vmatprep.subr.mxu1 %v3911_v1 }
 0x37e   :  { %3465 = vmatpush3.msra.mxu1 %v3965_v7 }
 0x37f   :  { %3466 = vmatprep.subr.mxu1 %v3911_v1 }
 0x380   :  { %3467 = vmatpush3.msra.mxu1 %v3988_v15 }
 0x381   :  { %3468 = vmatprep.subr.mxu1 %v3911_v1 }
 0x382   :  { %3469 = vmatpush3.msra.mxu1 %v4006_v24 }
 0x383   :  { %3484 = vmatprep.subr.mxu1 %v835_v16 }
 0x43b   :  { %v582_v60 = vpop.f32.mrf.mxu1 }
 0x43c   :  { %v586_v61 = vadd.f32 %v582_v60, %v4039_v34 }
 0x43d   :  { %v3450_v62 = vpop.f32.mrf.mxu1 }
 0x43e   :  { %3807 = vtanh.f32 %v586_v61 }
 0x44b   :  { %v3808_v63 = vpop.eup %3807 }
 0x44c   :  { %3460 = vmatmul.mubr.msk.f32.vlgmr.msra.gmra.mxu0 %vm200_vm3, %v3808_v63 }
 0x44d   :  { %3474 = vmatpush3.msra.mxu0 %v3963_v6  ;;  %3481 = vmatprep.mubr.msk.f32.mxu0 %vm3913_vm0, %v3911_v1 }
 0x44e   :  { %3475 = vmatprep.subr.mxu0 %v3911_v1 }
 0x44f   :  { %3476 = vmatpush3.msra.mxu0 %v3965_v7 }
 0x450   :  { %3477 = vmatprep.subr.mxu0 %v3911_v1 }
 0x451   :  { %3478 = vmatpush3.msra.mxu0 %v3988_v15 }
 0x452   :  { %3479 = vmatprep.subr.mxu0 %v3911_v1 }
 0x453   :  { %3480 = vmatpush3.msra.mxu0 %v4006_v24 }
 0x454   :  { %3495 = vmatprep.subr.mxu0 %v3911_v1 }
 0x50c   :  { %v657_v0 = vpop.f32.mrf.mxu0 }
 0x50d   :  { %v662_v2 = vrot.slane %v657_v0, 6 }
 0x50e   :  { %v3461_v3 = vpop.f32.mrf.mxu0 }
 0x50f   :  { %v664_v4 = vadd.f32 %v662_v2, %v4039_v34 }
 0x511   :  { %3809 = vtanh.f32 %v664_v4 }
 0x51e   :  { %v3810_v5 = vpop.eup %3809 }
 0x51f   :  { %v667_v6 = vrot.slane %v3810_v5, 2  ;;  %v829_v13 = vsel %vm824_vm4, %v3808_v63, %v3810_v5 }
 0x521   :  { %3471 = vmatmul.mubr.msk.f32.vlgmr.msra.gmra.mxu1 %vm200_vm3, %v667_v6 }
 0x522   :  { %3492 = vmatprep.mubr.msk.f32.mxu1 %vm200_vm3, %v828_v59  ;;  %3485 = vmatpush3.msra.mxu1 %v835_v16  ;;  %v1560_v16 = vld [vmem:[#allocation2 + $0x38] sm:$0xff] }
 0x523   :  { %3486 = vmatprep.subr.mxu1 %v834_v17 }
 0x524   :  { %3487 = vmatpush3.msra.mxu1 %v834_v17  ;;  %v1559_v17 = vld [vmem:[#allocation2 + $0x30] sm:$0xff] }
 0x525   :  { %3488 = vmatprep.subr.mxu1 %v833_v20 }
 0x526   :  { %3489 = vmatpush3.msra.mxu1 %v833_v20  ;;  %v1558_v20 = vld [vmem:[#allocation2 + $0x28] sm:$0xff] }
 0x527   :  { %3490 = vmatprep.subr.mxu1 %v832_v22 }
 0x528   :  { %3491 = vmatpush3.msra.mxu1 %v832_v22  ;;  %v1557_v22 = vld [vmem:[#allocation2 + $0x20] sm:$0xff] }
 0x529   :  { %3506 = vmatprep.subr.mxu1 %v3911_v1 }
 0x5e1   :  { %v736_v7 = vpop.f32.mrf.mxu1 }
 0x5e2   :  { %v741_v8 = vrot.slane %v736_v7, 4 }
 0x5e3   :  { %v3472_v10 = vpop.f32.mrf.mxu1 }
 0x5e4   :  { %v743_v11 = vadd.f32 %v741_v8, %v4039_v34 }
 0x5e6   :  { %3811 = vtanh.f32 %v743_v11 }
 0x5f3   :  { %v3812_v12 = vpop.eup %3811 }
 0x5f4   :  { %v746_v14 = vrot.slane %v3812_v12, 4  ;;  %v830_v15 = vsel %vm121_vm1, %v829_v13, %v3812_v12 }
 0x5f6   :  { %3482 = vmatmul.mubr.msk.f32.vlgmr.msra.gmra.mxu0 %vm200_vm3, %v746_v14 }
 0x5f7   :  { %3503 = vmatprep.mubr.msk.f32.mxu0 %vm3913_vm0, %v3911_v1  ;;  %3496 = vmatpush3.msra.mxu0 %v4108_v18 }
 0x5f8   :  { %3497 = vmatprep.subr.mxu0 %v3911_v1 }
 0x5f9   :  { %3498 = vmatpush3.msra.mxu0 %v4111_v19 }
 0x5fa   :  { %3499 = vmatprep.subr.mxu0 %v3911_v1 }
 0x5fb   :  { %3500 = vmatpush3.msra.mxu0 %v4114_v21 }
 0x5fc   :  { %3501 = vmatprep.subr.mxu0 %v3911_v1 }
 0x5fd   :  { %3502 = vmatpush3.msra.mxu0 %v4121_v23 }
 0x5fe   :  { %3504 = vmatmul.mubr.f32.vlgmr.msra.gmra.mxu0 %v3911_v1  ;;  %3517 = vmatprep.subr.mxu0 %v3911_v1 }
 0x5ff   :  { %3518 = vmatpush3.msra.mxu0 %v4108_v18  ;;  %3525 = vmatprep.mubr.msk.f32.mxu0 %vm3913_vm0, %v3911_v1 }
 0x600   :  { %3519 = vmatprep.subr.mxu0 %v3911_v1 }
 0x601   :  { %3520 = vmatpush3.msra.mxu0 %v4111_v19 }
 0x602   :  { %3521 = vmatprep.subr.mxu0 %v3911_v1 }
 0x603   :  { %3522 = vmatpush3.msra.mxu0 %v4114_v21 }
 0x604   :  { %3523 = vmatprep.subr.mxu0 %v3911_v1 }
 0x605   :  { %3524 = vmatpush3.msra.mxu0 %v4121_v23 }
 0x606   :  { %3539 = vmatprep.subr.mxu0 %v3911_v1 }
 0x6b6   :  { %v815_v24 = vpop.f32.mrf.mxu0 }
 0x6b7   :  { %v820_v25 = vrot.slane %v815_v24, 2 }
 0x6b8   :  { %v3483_v26 = vpop.f32.mrf.mxu0 }
 0x6b9   :  { %v822_v27 = vadd.f32 %v820_v25, %v4039_v34 }
 0x6bb   :  { %3813 = vtanh.f32 %v822_v27 }
 0x6be   :  { %v996_v30 = vpop.f32.mrf.mxu0 }
 0x6c0   :  { %v3505_v31 = vpop.f32.mrf.mxu0 }
 0x6c8   :  { %v3814_v28 = vpop.eup %3813 }
 0x6c9   :  { %v831_v29 = vsel %vm827_vm5, %v830_v15, %v3814_v28 }
 0x6ca   :  { %3493 = vmatmul.mubr.msk.f32.vlgmr.msra.gmra.mxu1 %vm200_vm3, %v831_v29 }
 0x6cb   :  { %3507 = vmatpush3.msra.mxu1 %v4108_v18  ;;  %3514 = vmatprep.mubr.msk.f32.mxu1 %vm3913_vm0, %v3911_v1 }
 0x6cc   :  { %3508 = vmatprep.subr.mxu1 %v3911_v1 }
 0x6cd   :  { %3509 = vmatpush3.msra.mxu1 %v4111_v19 }
 0x6ce   :  { %3510 = vmatprep.subr.mxu1 %v3911_v1 }
 0x6cf   :  { %3511 = vmatpush3.msra.mxu1 %v4114_v21 }
 0x6d0   :  { %3512 = vmatprep.subr.mxu1 %v3911_v1 }
 0x6d1   :  { %3513 = vmatpush3.msra.mxu1 %v4121_v23 }
 0x6d2   :  { %3528 = vmatprep.subr.mxu1 %v3911_v1 }
 0x78a   :  { %v3494_v33 = vpop.f32.mrf.mxu1 }
 0x78b   :  { %v4152_v34 = vadd.f32 %v3494_v33, %v3169_v32 }
 0x78c   :  { %v921_v35 = vpop.f32.mrf.mxu1 }
 0x78d   :  { %v922_v36 = vadd.f32 %v3169_v32, %v921_v35  ;;  %v3180_v32 = vld [vmem:[%s4502_s4 + $0x2] ss:$0 sm:$0xff] }
 0x78f   :  { %v1000_v37 = vadd.f32 %v996_v30, %v922_v36 }
 0x791   :  { %3815 = vtanh.f32 %v1000_v37 }
 0x79e   :  { %v3816_v38 = vpop.eup %3815 }
 0x79f   :  { %3515 = vmatmul.mubr.msk.f32.vlgmr.msra.gmra.mxu1 %vm200_vm3, %v3816_v38 }
 0x7a0   :  { %3529 = vmatpush3.msra.mxu1 %v4108_v18  ;;  %3536 = vmatprep.mubr.msk.f32.mxu1 %vm3913_vm0, %v3911_v1 }
 0x7a1   :  { %3530 = vmatprep.subr.mxu1 %v3911_v1 }
 0x7a2   :  { %3531 = vmatpush3.msra.mxu1 %v4111_v19 }
 0x7a3   :  { %3532 = vmatprep.subr.mxu1 %v3911_v1 }
 0x7a4   :  { %3533 = vmatpush3.msra.mxu1 %v4114_v21 }
 0x7a5   :  { %3534 = vmatprep.subr.mxu1 %v3911_v1 }
 0x7a6   :  { %3535 = vmatpush3.msra.mxu1 %v4121_v23 }
 0x7a7   :  { %3550 = vmatprep.subr.mxu1 %v3911_v1 }
 0x85f   :  { %v1071_v39 = vpop.f32.mrf.mxu1 }
 0x860   :  { %v1076_v40 = vrot.slane %v1071_v39, 6 }
 0x861   :  { %v3516_v41 = vpop.f32.mrf.mxu1 }
 0x862   :  { %v1078_v42 = vadd.f32 %v1076_v40, %v922_v36 }
 0x864   :  { %3817 = vtanh.f32 %v1078_v42 }
 0x871   :  { %v3818_v43 = vpop.eup %3817 }
 0x872   :  { %v1081_v44 = vrot.slane %v3818_v43, 2  ;;  %v1550_v50 = vsel %vm824_vm4, %v3816_v38, %v3818_v43 }
 0x874   :  { %3526 = vmatmul.mubr.msk.f32.vlgmr.msra.gmra.mxu0 %vm200_vm3, %v1081_v44 }
 0x875   :  { %3540 = vmatpush3.msra.mxu0 %v4108_v18  ;;  %3547 = vmatprep.mubr.msk.f32.mxu0 %vm3913_vm0, %v3911_v1 }
 0x876   :  { %3541 = vmatprep.subr.mxu0 %v3911_v1 }
 0x877   :  { %3542 = vmatpush3.msra.mxu0 %v4111_v19 }
 0x878   :  { %3543 = vmatprep.subr.mxu0 %v3911_v1 }
 0x879   :  { %3544 = vmatpush3.msra.mxu0 %v4114_v21 }
 0x87a   :  { %3545 = vmatprep.subr.mxu0 %v3911_v1 }
 0x87b   :  { %3546 = vmatpush3.msra.mxu0 %v4121_v23 }
 0x87c   :  { %3561 = vmatprep.subr.mxu0 %v3911_v1 }
 0x934   :  { %v1150_v45 = vpop.f32.mrf.mxu0 }
 0x935   :  { %v1155_v46 = vrot.slane %v1150_v45, 4 }
 0x936   :  { %v3527_v47 = vpop.f32.mrf.mxu0 }
 0x937   :  { %v1157_v48 = vadd.f32 %v1155_v46, %v922_v36 }
 0x939   :  { %3819 = vtanh.f32 %v1157_v48 }
 0x946   :  { %v3820_v49 = vpop.eup %3819 }
 0x947   :  { %v1160_v51 = vrot.slane %v3820_v49, 4  ;;  %v1551_v52 = vsel %vm121_vm1, %v1550_v50, %v3820_v49 }
 0x949   :  { %3537 = vmatmul.mubr.msk.f32.vlgmr.msra.gmra.mxu1 %vm200_vm3, %v1160_v51 }
 0x94a   :  { %3551 = vmatpush3.msra.mxu1 %v4108_v18  ;;  %3558 = vmatprep.mubr.msk.f32.mxu1 %vm3913_vm0, %v3911_v1 }
 0x94b   :  { %3552 = vmatprep.subr.mxu1 %v3911_v1 }
 0x94c   :  { %3553 = vmatpush3.msra.mxu1 %v4111_v19 }
 0x94d   :  { %3554 = vmatprep.subr.mxu1 %v3911_v1 }
 0x94e   :  { %3555 = vmatpush3.msra.mxu1 %v4114_v21 }
 0x94f   :  { %3556 = vmatprep.subr.mxu1 %v3911_v1 }
 0x950   :  { %3557 = vmatpush3.msra.mxu1 %v4121_v23 }
 0x951   :  { %3572 = vmatprep.subr.mxu1 %v3911_v1 }
 0xa09   :  { %v1229_v53 = vpop.f32.mrf.mxu1 }
 0xa0a   :  { %v1234_v54 = vrot.slane %v1229_v53, 2 }
 0xa0b   :  { %v3538_v55 = vpop.f32.mrf.mxu1 }
 0xa0c   :  { %v1236_v56 = vadd.f32 %v1234_v54, %v922_v36 }
 0xa0e   :  { %3821 = vtanh.f32 %v1236_v56 }
 0xa1b   :  { %v3822_v57 = vpop.eup %3821 }
 0xa1c   :  { %v1239_v58 = vrot.slane %v3822_v57, 6  ;;  %v1552_v59 = vsel %vm827_vm5, %v1551_v52, %v3822_v57 }
 0xa1e   :  { %3548 = vmatmul.mubr.msk.f32.vlgmr.msra.gmra.mxu0 %vm200_vm3, %v1239_v58 }
 0xa1f   :  { %3562 = vmatpush3.msra.mxu0 %v4108_v18  ;;  %3569 = vmatprep.mubr.msk.f32.mxu0 %vm3913_vm0, %v3911_v1 }
 0xa20   :  { %3563 = vmatprep.subr.mxu0 %v3911_v1 }
 0xa21   :  { %3564 = vmatpush3.msra.mxu0 %v4111_v19 }
 0xa22   :  { %3565 = vmatprep.subr.mxu0 %v3911_v1 }
 0xa23   :  { %3566 = vmatpush3.msra.mxu0 %v4114_v21 }
 0xa24   :  { %3567 = vmatprep.subr.mxu0 %v3911_v1 }
 0xa25   :  { %3568 = vmatpush3.msra.mxu0 %v4121_v23 }
 0xa26   :  { %3583 = vmatprep.subr.mxu0 %v1560_v16 }
 0xade   :  { %v1308_v60 = vpop.f32.mrf.mxu0 }
 0xadf   :  { %v1312_v61 = vadd.f32 %v1308_v60, %v4152_v34 }
 0xae0   :  { %v3549_v62 = vpop.f32.mrf.mxu0 }
 0xae1   :  { %3823 = vtanh.f32 %v1312_v61 }
 0xaee   :  { %v3824_v63 = vpop.eup %3823 }
 0xaef   :  { %3559 = vmatmul.mubr.msk.f32.vlgmr.msra.gmra.mxu1 %vm200_vm3, %v3824_v63 }
 0xaf0   :  { %3573 = vmatpush3.msra.mxu1 %v4108_v18  ;;  %3580 = vmatprep.mubr.msk.f32.mxu1 %vm3913_vm0, %v3911_v1  ;;  %v4221_v18 = vld [vmem:[#allocation4 + $0x58] sm:$0xff] }
 0xaf1   :  { %3574 = vmatprep.subr.mxu1 %v3911_v1 }
 0xaf2   :  { %3575 = vmatpush3.msra.mxu1 %v4111_v19  ;;  %v4224_v19 = vld [vmem:[#allocation4 + $0x50] sm:$0xff] }
 0xaf3   :  { %3576 = vmatprep.subr.mxu1 %v3911_v1 }
 0xaf4   :  { %3577 = vmatpush3.msra.mxu1 %v4114_v21  ;;  %v4227_v21 = vld [vmem:[#allocation4 + $0x48] sm:$0xff] }
 0xaf5   :  { %3578 = vmatprep.subr.mxu1 %v3911_v1 }
 0xaf6   :  { %3579 = vmatpush3.msra.mxu1 %v4121_v23  ;;  %v4234_v23 = vld [vmem:[#allocation4 + $0x40] sm:$0xff] }
 0xaf7   :  { %3594 = vmatprep.subr.mxu1 %v3911_v1 }
 0xbaf   :  { %v1383_v0 = vpop.f32.mrf.mxu1 }
 0xbb0   :  { %v1388_v2 = vrot.slane %v1383_v0, 6 }
 0xbb1   :  { %v3560_v3 = vpop.f32.mrf.mxu1 }
 0xbb2   :  { %v1390_v4 = vadd.f32 %v1388_v2, %v4152_v34 }
 0xbb4   :  { %3825 = vtanh.f32 %v1390_v4 }
 0xbc1   :  { %v3826_v5 = vpop.eup %3825 }
 0xbc2   :  { %v1393_v6 = vrot.slane %v3826_v5, 2  ;;  %v1553_v13 = vsel %vm824_vm4, %v3824_v63, %v3826_v5 }
 0xbc4   :  { %3570 = vmatmul.mubr.msk.f32.vlgmr.msra.gmra.mxu0 %vm200_vm3, %v1393_v6 }
 0xbc5   :  { %3591 = vmatprep.mubr.msk.f32.mxu0 %vm200_vm3, %v1552_v59  ;;  %3584 = vmatpush3.msra.mxu0 %v1560_v16  ;;  %v2285_v16 = vld [vmem:[#allocation2 + $0x58] sm:$0xff] }
 0xbc6   :  { %3585 = vmatprep.subr.mxu0 %v1559_v17 }
 0xbc7   :  { %3586 = vmatpush3.msra.mxu0 %v1559_v17  ;;  %v2284_v17 = vld [vmem:[#allocation2 + $0x50] sm:$0xff] }
 0xbc8   :  { %3587 = vmatprep.subr.mxu0 %v1558_v20 }
 0xbc9   :  { %3588 = vmatpush3.msra.mxu0 %v1558_v20  ;;  %v2283_v20 = vld [vmem:[#allocation2 + $0x48] sm:$0xff] }
 0xbca   :  { %3589 = vmatprep.subr.mxu0 %v1557_v22 }
 0xbcb   :  { %3590 = vmatpush3.msra.mxu0 %v1557_v22  ;;  %v2282_v22 = vld [vmem:[#allocation2 + $0x40] sm:$0xff] }
 0xbcc   :  { %3605 = vmatprep.subr.mxu0 %v3911_v1 }
 0xc84   :  { %v1462_v7 = vpop.f32.mrf.mxu0 }
 0xc85   :  { %v1467_v8 = vrot.slane %v1462_v7, 4 }
 0xc86   :  { %v3571_v10 = vpop.f32.mrf.mxu0 }
 0xc87   :  { %v1469_v11 = vadd.f32 %v1467_v8, %v4152_v34 }
 0xc89   :  { %3827 = vtanh.f32 %v1469_v11 }
 0xc96   :  { %v3828_v12 = vpop.eup %3827 }
 0xc97   :  { %v1472_v14 = vrot.slane %v3828_v12, 4  ;;  %v1554_v15 = vsel %vm121_vm1, %v1553_v13, %v3828_v12 }
 0xc99   :  { %3581 = vmatmul.mubr.msk.f32.vlgmr.msra.gmra.mxu1 %vm200_vm3, %v1472_v14 }
 0xc9a   :  { %3602 = vmatprep.mubr.msk.f32.mxu1 %vm3913_vm0, %v3911_v1  ;;  %3595 = vmatpush3.msra.mxu1 %v4221_v18 }
 0xc9b   :  { %3596 = vmatprep.subr.mxu1 %v3911_v1 }
 0xc9c   :  { %3597 = vmatpush3.msra.mxu1 %v4224_v19 }
 0xc9d   :  { %3598 = vmatprep.subr.mxu1 %v3911_v1 }
 0xc9e   :  { %3599 = vmatpush3.msra.mxu1 %v4227_v21 }
 0xc9f   :  { %3600 = vmatprep.subr.mxu1 %v3911_v1 }
 0xca0   :  { %3601 = vmatpush3.msra.mxu1 %v4234_v23 }
 0xca1   :  { %3603 = vmatmul.mubr.f32.vlgmr.msra.gmra.mxu1 %v3911_v1  ;;  %3616 = vmatprep.subr.mxu1 %v3911_v1 }
 0xca2   :  { %3617 = vmatpush3.msra.mxu1 %v4221_v18  ;;  %3624 = vmatprep.mubr.msk.f32.mxu1 %vm3913_vm0, %v3911_v1 }
 0xca3   :  { %3618 = vmatprep.subr.mxu1 %v3911_v1 }
 0xca4   :  { %3619 = vmatpush3.msra.mxu1 %v4224_v19 }
 0xca5   :  { %3620 = vmatprep.subr.mxu1 %v3911_v1 }
 0xca6   :  { %3621 = vmatpush3.msra.mxu1 %v4227_v21 }
 0xca7   :  { %3622 = vmatprep.subr.mxu1 %v3911_v1 }
 0xca8   :  { %3623 = vmatpush3.msra.mxu1 %v4234_v23 }
 0xca9   :  { %3638 = vmatprep.subr.mxu1 %v3911_v1 }
 0xd59   :  { %v1541_v24 = vpop.f32.mrf.mxu1 }
 0xd5a   :  { %v1546_v25 = vrot.slane %v1541_v24, 2 }
 0xd5b   :  { %v3582_v26 = vpop.f32.mrf.mxu1 }
 0xd5c   :  { %v1548_v27 = vadd.f32 %v1546_v25, %v4152_v34 }
 0xd5e   :  { %3829 = vtanh.f32 %v1548_v27 }
 0xd61   :  { %v1721_v30 = vpop.f32.mrf.mxu1 }
 0xd63   :  { %v3604_v31 = vpop.f32.mrf.mxu1 }
 0xd6b   :  { %v3830_v28 = vpop.eup %3829 }
 0xd6c   :  { %v1555_v29 = vsel %vm827_vm5, %v1554_v15, %v3830_v28 }
 0xd6d   :  { %3592 = vmatmul.mubr.msk.f32.vlgmr.msra.gmra.mxu0 %vm200_vm3, %v1555_v29 }
 0xd6e   :  { %3606 = vmatpush3.msra.mxu0 %v4221_v18  ;;  %3613 = vmatprep.mubr.msk.f32.mxu0 %vm3913_vm0, %v3911_v1 }
 0xd6f   :  { %3607 = vmatprep.subr.mxu0 %v3911_v1 }
 0xd70   :  { %3608 = vmatpush3.msra.mxu0 %v4224_v19 }
 0xd71   :  { %3609 = vmatprep.subr.mxu0 %v3911_v1 }
 0xd72   :  { %3610 = vmatpush3.msra.mxu0 %v4227_v21 }
 0xd73   :  { %3611 = vmatprep.subr.mxu0 %v3911_v1 }
 0xd74   :  { %3612 = vmatpush3.msra.mxu0 %v4234_v23 }
 0xd75   :  { %3627 = vmatprep.subr.mxu0 %v3911_v1 }
 0xe2d   :  { %v3593_v33 = vpop.f32.mrf.mxu0 }
 0xe2e   :  { %v4265_v34 = vadd.f32 %v3593_v33, %v3180_v32 }
 0xe2f   :  { %v1646_v35 = vpop.f32.mrf.mxu0 }
 0xe30   :  { %v1647_v36 = vadd.f32 %v3180_v32, %v1646_v35  ;;  %v3191_v32 = vld [vmem:[%s4502_s4 + $0x3] ss:$0 sm:$0xff] }
 0xe32   :  { %v1725_v37 = vadd.f32 %v1721_v30, %v1647_v36 }
 0xe34   :  { %3831 = vtanh.f32 %v1725_v37 }
 0xe41   :  { %v3832_v38 = vpop.eup %3831 }
 0xe42   :  { %3614 = vmatmul.mubr.msk.f32.vlgmr.msra.gmra.mxu0 %vm200_vm3, %v3832_v38 }
 0xe43   :  { %3628 = vmatpush3.msra.mxu0 %v4221_v18  ;;  %3635 = vmatprep.mubr.msk.f32.mxu0 %vm3913_vm0, %v3911_v1 }
 0xe44   :  { %3629 = vmatprep.subr.mxu0 %v3911_v1 }
 0xe45   :  { %3630 = vmatpush3.msra.mxu0 %v4224_v19 }
 0xe46   :  { %3631 = vmatprep.subr.mxu0 %v3911_v1 }
 0xe47   :  { %3632 = vmatpush3.msra.mxu0 %v4227_v21 }
 0xe48   :  { %3633 = vmatprep.subr.mxu0 %v3911_v1 }
 0xe49   :  { %3634 = vmatpush3.msra.mxu0 %v4234_v23 }
 0xe4a   :  { %3649 = vmatprep.subr.mxu0 %v3911_v1 }
 0xf02   :  { %v1796_v39 = vpop.f32.mrf.mxu0 }
 0xf03   :  { %v1801_v40 = vrot.slane %v1796_v39, 6 }
 0xf04   :  { %v3615_v41 = vpop.f32.mrf.mxu0 }
 0xf05   :  { %v1803_v42 = vadd.f32 %v1801_v40, %v1647_v36 }
 0xf07   :  { %3833 = vtanh.f32 %v1803_v42 }
 0xf14   :  { %v3834_v43 = vpop.eup %3833 }
 0xf15   :  { %v1806_v44 = vrot.slane %v3834_v43, 2  ;;  %v2275_v50 = vsel %vm824_vm4, %v3832_v38, %v3834_v43 }
 0xf17   :  { %3625 = vmatmul.mubr.msk.f32.vlgmr.msra.gmra.mxu1 %vm200_vm3, %v1806_v44 }
 0xf18   :  { %3639 = vmatpush3.msra.mxu1 %v4221_v18  ;;  %3646 = vmatprep.mubr.msk.f32.mxu1 %vm3913_vm0, %v3911_v1 }
 0xf19   :  { %3640 = vmatprep.subr.mxu1 %v3911_v1 }
 0xf1a   :  { %3641 = vmatpush3.msra.mxu1 %v4224_v19 }
 0xf1b   :  { %3642 = vmatprep.subr.mxu1 %v3911_v1 }
 0xf1c   :  { %3643 = vmatpush3.msra.mxu1 %v4227_v21 }
 0xf1d   :  { %3644 = vmatprep.subr.mxu1 %v3911_v1 }
 0xf1e   :  { %3645 = vmatpush3.msra.mxu1 %v4234_v23 }
 0xf1f   :  { %3660 = vmatprep.subr.mxu1 %v3911_v1 }
 0xfd7   :  { %v1875_v45 = vpop.f32.mrf.mxu1 }
 0xfd8   :  { %v1880_v46 = vrot.slane %v1875_v45, 4 }
 0xfd9   :  { %v3626_v47 = vpop.f32.mrf.mxu1 }
 0xfda   :  { %v1882_v48 = vadd.f32 %v1880_v46, %v1647_v36 }
 0xfdc   :  { %3835 = vtanh.f32 %v1882_v48 }
 0xfe9   :  { %v3836_v49 = vpop.eup %3835 }
 0xfea   :  { %v1885_v51 = vrot.slane %v3836_v49, 4  ;;  %v2276_v52 = vsel %vm121_vm1, %v2275_v50, %v3836_v49 }
 0xfec   :  { %3636 = vmatmul.mubr.msk.f32.vlgmr.msra.gmra.mxu0 %vm200_vm3, %v1885_v51 }
 0xfed   :  { %3650 = vmatpush3.msra.mxu0 %v4221_v18  ;;  %3657 = vmatprep.mubr.msk.f32.mxu0 %vm3913_vm0, %v3911_v1 }
 0xfee   :  { %3651 = vmatprep.subr.mxu0 %v3911_v1 }
 0xfef   :  { %3652 = vmatpush3.msra.mxu0 %v4224_v19 }
 0xff0   :  { %3653 = vmatprep.subr.mxu0 %v3911_v1 }
 0xff1   :  { %3654 = vmatpush3.msra.mxu0 %v4227_v21 }
 0xff2   :  { %3655 = vmatprep.subr.mxu0 %v3911_v1 }
 0xff3   :  { %3656 = vmatpush3.msra.mxu0 %v4234_v23 }
 0xff4   :  { %3671 = vmatprep.subr.mxu0 %v3911_v1 }
0x10ac   :  { %v1954_v53 = vpop.f32.mrf.mxu0 }
0x10ad   :  { %v1959_v54 = vrot.slane %v1954_v53, 2 }
0x10ae   :  { %v3637_v55 = vpop.f32.mrf.mxu0 }
0x10af   :  { %v1961_v56 = vadd.f32 %v1959_v54, %v1647_v36 }
0x10b1   :  { %3837 = vtanh.f32 %v1961_v56 }
0x10be   :  { %v3838_v57 = vpop.eup %3837 }
0x10bf   :  { %v1964_v58 = vrot.slane %v3838_v57, 6  ;;  %v2277_v59 = vsel %vm827_vm5, %v2276_v52, %v3838_v57 }
0x10c1   :  { %3647 = vmatmul.mubr.msk.f32.vlgmr.msra.gmra.mxu1 %vm200_vm3, %v1964_v58 }
0x10c2   :  { %3661 = vmatpush3.msra.mxu1 %v4221_v18  ;;  %3668 = vmatprep.mubr.msk.f32.mxu1 %vm3913_vm0, %v3911_v1 }
0x10c3   :  { %3662 = vmatprep.subr.mxu1 %v3911_v1 }
0x10c4   :  { %3663 = vmatpush3.msra.mxu1 %v4224_v19 }
0x10c5   :  { %3664 = vmatprep.subr.mxu1 %v3911_v1 }
0x10c6   :  { %3665 = vmatpush3.msra.mxu1 %v4227_v21 }
0x10c7   :  { %3666 = vmatprep.subr.mxu1 %v3911_v1 }
0x10c8   :  { %3667 = vmatpush3.msra.mxu1 %v4234_v23 }
0x10c9   :  { %3682 = vmatprep.subr.mxu1 %v2285_v16 }
0x1181   :  { %v2033_v60 = vpop.f32.mrf.mxu1 }
0x1182   :  { %v2037_v61 = vadd.f32 %v2033_v60, %v4265_v34 }
0x1183   :  { %v3648_v62 = vpop.f32.mrf.mxu1 }
0x1184   :  { %3839 = vtanh.f32 %v2037_v61 }
0x1191   :  { %v3840_v63 = vpop.eup %3839 }
0x1192   :  { %3658 = vmatmul.mubr.msk.f32.vlgmr.msra.gmra.mxu0 %vm200_vm3, %v3840_v63 }
0x1193   :  { %3672 = vmatpush3.msra.mxu0 %v4221_v18  ;;  %3679 = vmatprep.mubr.msk.f32.mxu0 %vm3913_vm0, %v3911_v1  ;;  %v4334_v18 = vld [vmem:[#allocation4 + $0x78] sm:$0xff] }
0x1194   :  { %3673 = vmatprep.subr.mxu0 %v3911_v1 }
0x1195   :  { %3674 = vmatpush3.msra.mxu0 %v4224_v19  ;;  %v4337_v19 = vld [vmem:[#allocation4 + $0x70] sm:$0xff] }
0x1196   :  { %3675 = vmatprep.subr.mxu0 %v3911_v1 }
0x1197   :  { %3676 = vmatpush3.msra.mxu0 %v4227_v21  ;;  %v4340_v21 = vld [vmem:[#allocation4 + $0x68] sm:$0xff] }
0x1198   :  { %3677 = vmatprep.subr.mxu0 %v3911_v1 }
0x1199   :  { %3678 = vmatpush3.msra.mxu0 %v4234_v23  ;;  %v4347_v23 = vld [vmem:[#allocation4 + $0x60] sm:$0xff] }
0x119a   :  { %3693 = vmatprep.subr.mxu0 %v3911_v1 }
0x1252   :  { %v2108_v0 = vpop.f32.mrf.mxu0 }
0x1253   :  { %v2113_v2 = vrot.slane %v2108_v0, 6 }
0x1254   :  { %v3659_v3 = vpop.f32.mrf.mxu0 }
0x1255   :  { %v2115_v4 = vadd.f32 %v2113_v2, %v4265_v34 }
0x1257   :  { %3841 = vtanh.f32 %v2115_v4 }
0x1264   :  { %v3842_v5 = vpop.eup %3841 }
0x1265   :  { %v2118_v6 = vrot.slane %v3842_v5, 2  ;;  %v2278_v13 = vsel %vm824_vm4, %v3840_v63, %v3842_v5 }
0x1267   :  { %3669 = vmatmul.mubr.msk.f32.vlgmr.msra.gmra.mxu1 %vm200_vm3, %v2118_v6 }
0x1268   :  { %3690 = vmatprep.mubr.msk.f32.mxu1 %vm200_vm3, %v2277_v59  ;;  %3683 = vmatpush3.msra.mxu1 %v2285_v16  ;;  %v3008_v16 = vld [vmem:[%s4503_s5 + $0x10] sm:$0xff] }
0x1269   :  { %3684 = vmatprep.subr.mxu1 %v2284_v17 }
0x126a   :  { %3685 = vmatpush3.msra.mxu1 %v2284_v17  ;;  %v3007_v17 = vld [vmem:[%s4503_s5 + $0x8] sm:$0xff] }
0x126b   :  { %3686 = vmatprep.subr.mxu1 %v2283_v20 }
0x126c   :  { %3687 = vmatpush3.msra.mxu1 %v2283_v20 }
0x126d   :  { %3688 = vmatprep.subr.mxu1 %v2282_v22 }
0x126e   :  { %3689 = vmatpush3.msra.mxu1 %v2282_v22 }
0x126f   :  { %3704 = vmatprep.subr.mxu1 %v3911_v1 }
0x1327   :  { %v2187_v7 = vpop.f32.mrf.mxu1 }
0x1328   :  { %v2192_v8 = vrot.slane %v2187_v7, 4 }
0x1329   :  { %v3670_v10 = vpop.f32.mrf.mxu1 }
0x132a   :  { %v2194_v11 = vadd.f32 %v2192_v8, %v4265_v34 }
0x132c   :  { %3843 = vtanh.f32 %v2194_v11 }
0x1339   :  { %v3844_v12 = vpop.eup %3843 }
0x133a   :  { %v2197_v14 = vrot.slane %v3844_v12, 4  ;;  %v2279_v15 = vsel %vm121_vm1, %v2278_v13, %v3844_v12 }
0x133c   :  { %3680 = vmatmul.mubr.msk.f32.vlgmr.msra.gmra.mxu0 %vm200_vm3, %v2197_v14 }
0x133d   :  { %3701 = vmatprep.mubr.msk.f32.mxu0 %vm3913_vm0, %v3911_v1  ;;  %3694 = vmatpush3.msra.mxu0 %v4334_v18 }
0x133e   :  { %3695 = vmatprep.subr.mxu0 %v3911_v1 }
0x133f   :  { %3696 = vmatpush3.msra.mxu0 %v4337_v19 }
0x1340   :  { %3697 = vmatprep.subr.mxu0 %v3911_v1 }
0x1341   :  { %3698 = vmatpush3.msra.mxu0 %v4340_v21 }
0x1342   :  { %3699 = vmatprep.subr.mxu0 %v3911_v1 }
0x1343   :  { %3700 = vmatpush3.msra.mxu0 %v4347_v23 }
0x1344   :  { %3702 = vmatmul.mubr.f32.vlgmr.msra.gmra.mxu0 %v3911_v1  ;;  %3715 = vmatprep.subr.mxu0 %v3911_v1 }
0x1345   :  { %3716 = vmatpush3.msra.mxu0 %v4334_v18  ;;  %3723 = vmatprep.mubr.msk.f32.mxu0 %vm3913_vm0, %v3911_v1 }
0x1346   :  { %3717 = vmatprep.subr.mxu0 %v3911_v1 }
0x1347   :  { %3718 = vmatpush3.msra.mxu0 %v4337_v19 }
0x1348   :  { %3719 = vmatprep.subr.mxu0 %v3911_v1 }
0x1349   :  { %3720 = vmatpush3.msra.mxu0 %v4340_v21 }
0x134a   :  { %3721 = vmatprep.subr.mxu0 %v3911_v1 }
0x134b   :  { %3722 = vmatpush3.msra.mxu0 %v4347_v23 }
0x134c   :  { %3737 = vmatprep.subr.mxu0 %v3911_v1 }
0x13fc   :  { %v2266_v24 = vpop.f32.mrf.mxu0 }
0x13fd   :  { %v2271_v25 = vrot.slane %v2266_v24, 2 }
0x13fe   :  { %v3681_v26 = vpop.f32.mrf.mxu0 }
0x13ff   :  { %v2273_v27 = vadd.f32 %v2271_v25, %v4265_v34  ;;  %v3201_v25 = vld [vmem:[%s4504_s6] ss:$0 sm:$0xff] }
0x1401   :  { %3845 = vtanh.f32 %v2273_v27 }
0x1404   :  { %v2446_v30 = vpop.f32.mrf.mxu0 }
0x1406   :  { %v3703_v31 = vpop.f32.mrf.mxu0 }
0x140e   :  { %v3846_v28 = vpop.eup %3845 }
0x140f   :  { %v2280_v29 = vsel %vm827_vm5, %v2279_v15, %v3846_v28  ;;  %v3009_v15 = vld [vmem:[%s4503_s5 + $0x18] sm:$0xff] }
0x1410   :  { %3691 = vmatmul.mubr.msk.f32.vlgmr.msra.gmra.mxu1 %vm200_vm3, %v2280_v29 }
0x1411   :  { %3705 = vmatpush3.msra.mxu1 %v4334_v18  ;;  %3712 = vmatprep.mubr.msk.f32.mxu1 %vm3913_vm0, %v3911_v1 }
0x1412   :  { %3706 = vmatprep.subr.mxu1 %v3911_v1 }
0x1413   :  { %3707 = vmatpush3.msra.mxu1 %v4337_v19 }
0x1414   :  { %3708 = vmatprep.subr.mxu1 %v3911_v1 }
0x1415   :  { %3709 = vmatpush3.msra.mxu1 %v4340_v21 }
0x1416   :  { %3710 = vmatprep.subr.mxu1 %v3911_v1 }
0x1417   :  { %3711 = vmatpush3.msra.mxu1 %v4347_v23 }
0x1418   :  { %3726 = vmatprep.subr.mxu1 %v3911_v1 }
0x14d0   :  { %v3692_v33 = vpop.f32.mrf.mxu1 }
0x14d1   :  { %v4378_v34 = vadd.f32 %v3692_v33, %v3191_v32 }
0x14d2   :  { %v2371_v35 = vpop.f32.mrf.mxu1 }
0x14d3   :  { %v2372_v36 = vadd.f32 %v3191_v32, %v2371_v35 }
0x14d5   :  { %v2450_v37 = vadd.f32 %v2446_v30, %v2372_v36 }
0x14d7   :  { %3847 = vtanh.f32 %v2450_v37 }
0x14e4   :  { %v3848_v38 = vpop.eup %3847 }
0x14e5   :  { %3713 = vmatmul.mubr.msk.f32.vlgmr.msra.gmra.mxu1 %vm200_vm3, %v3848_v38 }
0x14e6   :  { %3727 = vmatpush3.msra.mxu1 %v4334_v18  ;;  %3734 = vmatprep.mubr.msk.f32.mxu1 %vm3913_vm0, %v3911_v1 }
0x14e7   :  { %3728 = vmatprep.subr.mxu1 %v3911_v1 }
0x14e8   :  { %3729 = vmatpush3.msra.mxu1 %v4337_v19 }
0x14e9   :  { %3730 = vmatprep.subr.mxu1 %v3911_v1 }
0x14ea   :  { %3731 = vmatpush3.msra.mxu1 %v4340_v21 }
0x14eb   :  { %3732 = vmatprep.subr.mxu1 %v3911_v1 }
0x14ec   :  { %3733 = vmatpush3.msra.mxu1 %v4347_v23 }
0x14ed   :  { %3748 = vmatprep.subr.mxu1 %v3911_v1 }
0x15a5   :  { %v2521_v39 = vpop.f32.mrf.mxu1 }
0x15a6   :  { %v2526_v40 = vrot.slane %v2521_v39, 6 }
0x15a7   :  { %v3714_v41 = vpop.f32.mrf.mxu1 }
0x15a8   :  { %v2528_v42 = vadd.f32 %v2526_v40, %v2372_v36 }
0x15aa   :  { %3849 = vtanh.f32 %v2528_v42 }
0x15b7   :  { %v3850_v43 = vpop.eup %3849 }
0x15b8   :  { %v2531_v44 = vrot.slane %v3850_v43, 2  ;;  %v3000_v50 = vsel %vm824_vm4, %v3848_v38, %v3850_v43 }
0x15ba   :  { %3724 = vmatmul.mubr.msk.f32.vlgmr.msra.gmra.mxu0 %vm200_vm3, %v2531_v44 }
0x15bb   :  { %3738 = vmatpush3.msra.mxu0 %v4334_v18  ;;  %3745 = vmatprep.mubr.msk.f32.mxu0 %vm3913_vm0, %v3911_v1 }
0x15bc   :  { %3739 = vmatprep.subr.mxu0 %v3911_v1 }
0x15bd   :  { %3740 = vmatpush3.msra.mxu0 %v4337_v19 }
0x15be   :  { %3741 = vmatprep.subr.mxu0 %v3911_v1 }
0x15bf   :  { %3742 = vmatpush3.msra.mxu0 %v4340_v21 }
0x15c0   :  { %3743 = vmatprep.subr.mxu0 %v3911_v1 }
0x15c1   :  { %3744 = vmatpush3.msra.mxu0 %v4347_v23 }
0x15c2   :  { %3759 = vmatprep.subr.mxu0 %v3911_v1 }
0x167a   :  { %v2600_v45 = vpop.f32.mrf.mxu0 }
0x167b   :  { %v2605_v46 = vrot.slane %v2600_v45, 4 }
0x167c   :  { %v3725_v47 = vpop.f32.mrf.mxu0 }
0x167d   :  { %v2607_v48 = vadd.f32 %v2605_v46, %v2372_v36 }
0x167f   :  { %3851 = vtanh.f32 %v2607_v48 }
0x168c   :  { %v3852_v49 = vpop.eup %3851 }
0x168d   :  { %v2610_v51 = vrot.slane %v3852_v49, 4  ;;  %v3001_v52 = vsel %vm121_vm1, %v3000_v50, %v3852_v49 }
0x168f   :  { %3735 = vmatmul.mubr.msk.f32.vlgmr.msra.gmra.mxu1 %vm200_vm3, %v2610_v51 }
0x1690   :  { %3749 = vmatpush3.msra.mxu1 %v4334_v18  ;;  %3756 = vmatprep.mubr.msk.f32.mxu1 %vm3913_vm0, %v3911_v1 }
0x1691   :  { %3750 = vmatprep.subr.mxu1 %v3911_v1 }
0x1692   :  { %3751 = vmatpush3.msra.mxu1 %v4337_v19 }
0x1693   :  { %3752 = vmatprep.subr.mxu1 %v3911_v1 }
0x1694   :  { %3753 = vmatpush3.msra.mxu1 %v4340_v21 }
0x1695   :  { %3754 = vmatprep.subr.mxu1 %v3911_v1 }
0x1696   :  { %3755 = vmatpush3.msra.mxu1 %v4347_v23 }
0x1697   :  { %3770 = vmatprep.subr.mxu1 %v3911_v1 }
0x174f   :  { %v2679_v53 = vpop.f32.mrf.mxu1 }
0x1750   :  { %v2684_v54 = vrot.slane %v2679_v53, 2 }
0x1751   :  { %v3736_v55 = vpop.f32.mrf.mxu1 }
0x1752   :  { %v2686_v56 = vadd.f32 %v2684_v54, %v2372_v36 }
0x1754   :  { %3853 = vtanh.f32 %v2686_v56 }
0x1761   :  { %v3854_v57 = vpop.eup %3853 }
0x1762   :  { %v2689_v58 = vrot.slane %v3854_v57, 6  ;;  %v3002_v59 = vsel %vm827_vm5, %v3001_v52, %v3854_v57 }
0x1764   :  { %3746 = vmatmul.mubr.msk.f32.vlgmr.msra.gmra.mxu0 %vm200_vm3, %v2689_v58 }
0x1765   :  { %3760 = vmatpush3.msra.mxu0 %v4334_v18  ;;  %3767 = vmatprep.mubr.msk.f32.mxu0 %vm3913_vm0, %v3911_v1 }
0x1766   :  { %3761 = vmatprep.subr.mxu0 %v3911_v1 }
0x1767   :  { %3762 = vmatpush3.msra.mxu0 %v4337_v19 }
0x1768   :  { %3763 = vmatprep.subr.mxu0 %v3911_v1 }
0x1769   :  { %3764 = vmatpush3.msra.mxu0 %v4340_v21 }
0x176a   :  { %3765 = vmatprep.subr.mxu0 %v3911_v1 }
0x176b   :  { %3766 = vmatpush3.msra.mxu0 %v4347_v23 }
0x176c   :  { %3781 = vmatprep.subr.mxu0 %v3009_v15 }
0x1824   :  { %v2758_v60 = vpop.f32.mrf.mxu0 }
0x1825   :  { %v2762_v61 = vadd.f32 %v2758_v60, %v4378_v34 }
0x1826   :  { %v3747_v62 = vpop.f32.mrf.mxu0 }
0x1827   :  { %3855 = vtanh.f32 %v2762_v61 }
0x1834   :  { %v3856_v63 = vpop.eup %3855 }
0x1835   :  { %3757 = vmatmul.mubr.msk.f32.vlgmr.msra.gmra.mxu1 %vm200_vm3, %v3856_v63 }
0x1836   :  { %3771 = vmatpush3.msra.mxu1 %v4334_v18  ;;  %3778 = vmatprep.mubr.msk.f32.mxu1 %vm3913_vm0, %v3911_v1  ;;  %v3006_v18 = vld [vmem:[%s4503_s5] sm:$0xff] }
0x1837   :  { %3772 = vmatprep.subr.mxu1 %v3911_v1 }
0x1838   :  { %3773 = vmatpush3.msra.mxu1 %v4337_v19 }
0x1839   :  { %3774 = vmatprep.subr.mxu1 %v3911_v1 }
0x183a   :  { %3775 = vmatpush3.msra.mxu1 %v4340_v21 }
0x183b   :  { %3776 = vmatprep.subr.mxu1 %v3911_v1 }
0x183c   :  { %3777 = vmatpush3.msra.mxu1 %v4347_v23 }
0x18f5   :  { %v2833_v0 = vpop.f32.mrf.mxu1 }
0x18f6   :  { %v2838_v2 = vrot.slane %v2833_v0, 6 }
0x18f7   :  { %v3758_v3 = vpop.f32.mrf.mxu1 }
0x18f8   :  { %v2840_v4 = vadd.f32 %v2838_v2, %v4378_v34 }
0x18fa   :  { %3857 = vtanh.f32 %v2840_v4 }
0x1907   :  { %v3858_v5 = vpop.eup %3857 }
0x1908   :  { %v2843_v6 = vrot.slane %v3858_v5, 2  ;;  %v3003_v12 = vsel %vm824_vm4, %v3856_v63, %v3858_v5 }
0x190a   :  { %3768 = vmatmul.mubr.msk.f32.vlgmr.msra.gmra.mxu0 %vm200_vm3, %v2843_v6 }
0x190b   :  { %3789 = vmatprep.mubr.msk.f32.mxu0 %vm200_vm3, %v3002_v59  ;;  %3782 = vmatpush3.msra.mxu0 %v3009_v15 }
0x190c   :  { %3783 = vmatprep.subr.mxu0 %v3008_v16 }
0x190d   :  { %3784 = vmatpush3.msra.mxu0 %v3008_v16 }
0x190e   :  { %3785 = vmatprep.subr.mxu0 %v3007_v17 }
0x190f   :  { %3786 = vmatpush3.msra.mxu0 %v3007_v17 }
0x1910   :  { %3787 = vmatprep.subr.mxu0 %v3006_v18 }
0x1911   :  { %3788 = vmatpush3.msra.mxu0 %v3006_v18 }
0x19ca   :  { %v2912_v7 = vpop.f32.mrf.mxu0 }
0x19cb   :  { %v2917_v8 = vrot.slane %v2912_v7, 4 }
0x19cc   :  { %v3769_v10 = vpop.f32.mrf.mxu0 }
0x19cd   :  { %v2919_v11 = vadd.f32 %v2917_v8, %v4378_v34 }
0x19cf   :  { %3859 = vtanh.f32 %v2919_v11 }
0x19dc   :  { %v3860_v1 = vpop.eup %3859 }
0x19dd   :  { %v2922_v13 = vrot.slane %v3860_v1, 4  ;;  %v3004_v14 = vsel %vm121_vm1, %v3003_v12, %v3860_v1 }
0x19df   :  { %3779 = vmatmul.mubr.msk.f32.vlgmr.msra.gmra.mxu1 %vm200_vm3, %v2922_v13 }
0x1a9f   :  { %v2991_v19 = vpop.f32.mrf.mxu1 }
0x1aa0   :  { %v2996_v20 = vrot.slane %v2991_v19, 2 }
0x1aa1   :  { %v3780_v21 = vpop.f32.mrf.mxu1 }
0x1aa2   :  { %v2998_v22 = vadd.f32 %v2996_v20, %v4378_v34 }
0x1aa4   :  { %3861 = vtanh.f32 %v2998_v22 }
0x1ab1   :  { %v3862_v23 = vpop.eup %3861 }
0x1ab2   :  { %v3005_v24 = vsel %vm827_vm5, %v3004_v14, %v3862_v23 }
0x1ab3   :  { %3790 = vmatmul.mubr.msk.f32.vlgmr.msra.gmra.mxu0 %vm200_vm3, %v3005_v24 }
0x1b73   :  { %v3791_v26 = vpop.f32.mrf.mxu0 }
0x1b74   :  { %v3095_v27 = vadd.f32 %v3791_v26, %v3201_v25 }
0x1b75   :  { %v3089_v28 = vpop.f32.mrf.mxu0 }
0x1b76   :  { %v3117_v29 = vcombine.high %v3095_v27, %v3095_v27  ;;  %v3124_v30 = vrot.slane %v3095_v27, %v3970_v9  ;;  %v3090_v31 = vadd.f32 %v3201_v25, %v3089_v28 }
0x1b78   :  { %v3131_v32 = vrot.slane %v3117_v29, %v3970_v9  ;;  %v3132_v33 = vcombine.high %v3124_v30, %v3124_v30  ;;  %3147 = vst.msk [vmem:[%s4505_s7 + $0x8] sm:$0x3] %vm3142_vm6, %v3124_v30  ;;  %v3100_v34 = vcombine.high %v3090_v31, %v3090_v31  ;;  %v3107_v35 = vrot.slane %v3090_v31, %v3970_v9 }
0x1b7a   :  { %v3133_v36 = vcombine.high %v3131_v32, %v3131_v32  ;;  %3148 = vst.msk [vmem:[%s4505_s7 + $0xa] sm:$0x3] %vm3142_vm6, %v3132_v33  ;;  %3149 = vst.msk [vmem:[%s4505_s7 + $0xc] sm:$0x3] %vm3142_vm6, %v3131_v32  ;;  %v3114_v37 = vrot.slane %v3100_v34, %v3970_v9  ;;  %v3115_v38 = vcombine.high %v3107_v35, %v3107_v35 }
0x1b7b   :  { %3143 = vst.msk [vmem:[%s4505_s7] sm:$0x3] %vm3142_vm6, %v3107_v35 }
0x1b7c   :  { %3150 = vst.msk [vmem:[%s4505_s7 + $0xe] sm:$0x3] %vm3142_vm6, %v3133_v36  ;;  %v3116_v39 = vcombine.high %v3114_v37, %v3114_v37  ;;  %3144 = vst.msk [vmem:[%s4505_s7 + $0x2] sm:$0x3] %vm3142_vm6, %v3115_v38 }
0x1b7d   :  { %3145 = vst.msk [vmem:[%s4505_s7 + $0x4] sm:$0x3] %vm3142_vm6, %v3114_v37 }
0x1b7e   :  { %3146 = vst.msk [vmem:[%s4505_s7 + $0x6] sm:$0x3] %vm3142_vm6, %v3116_v39 }
0x1b7f   :  { %3155 = vsyncpa [#allocation3], 1 }
0x1b80   :  { %3156 = vsyncpa [#allocation5], 1 }

</bundles_post_ra>
